<compile_context>
chip_gen: v6e
topology: v6e:2x2x1
jax: 0.10.0
libtpu: 0.0.40
codegen_flags: <defaults>
</compile_context>

<pallas_src>
import functools

import jax
import jax.numpy as jnp
from jax import lax
from jax.experimental import pallas as pl
from jax.experimental.pallas import tpu as pltpu

# ---------------- model hyperparameters (small, deterministic) ----------------
N_NODES    = 16
INPUT_DIM  = 32
HIDDEN_DIM = 32
OUTPUT_DIM = 8
CONV_DEPTH = 2

LANE       = 128                         # lane-dense padded feature width
W_ROWS     = HIDDEN_DIM                  # live contraction rows per layer (== INPUT_DIM)
NUM_LAYERS = 4 + CONV_DEPTH              # enc(2) + conv(CONV_DEPTH) + dec(2)
BIAS_ROW0  = NUM_LAYERS * W_ROWS         # bias rows start here inside the slab
SLAB_ROWS  = BIAS_ROW0 + 8               # bias block padded to 8 sublanes -> (200, 128)


# ------------------------------- Pallas kernel --------------------------------
def gcn_forward_kernel(conv_depth, n_edges, edge_ref, x_ref, slab_ref, o_ref):
    """Fused GCN forward: A_hat build -> encoder MLP -> conv GCN layers -> decoder MLP.

    edge_ref : (2, E) int32 in SMEM (scalar prefetch).
    x_ref    : (N, 32) f32 node features (unpadded).
    slab_ref : (SLAB_ROWS, 128) f32 packed parameters:
               rows [l*32:(l+1)*32]  = zero-padded weight of layer l
               row  [BIAS_ROW0 + l]  = zero-padded bias of layer l
    All activations after layer 0 are (N, 128) lane-dense; padding lanes stay zero.
    """
    n = x_ref.shape[0]

    # ---- build D^-1/2 (A_sym + I) D^-1/2 on the VPU from SMEM edge scalars ----
    row = lax.broadcasted_iota(jnp.int32, (n, n), 0)
    col = lax.broadcasted_iota(jnp.int32, (n, n), 1)
    adj = row == col                                     # self loops (clamped to 1)
    for e in range(n_edges):                             # static unroll, E ~ 24
        s = edge_ref[0, e]
        d = edge_ref[1, e]
        adj = adj | ((row == s) & (col == d)) | ((row == d) & (col == s))
    a = adj.astype(jnp.float32)
    deg_r = jnp.sum(a, axis=1, keepdims=True)            # (n, 1) lane reduce
    deg_c = jnp.sum(a, axis=0, keepdims=True)            # (1, n) sublane reduce (A symmetric)
    inv_r = jnp.where(deg_r > 0, lax.rsqrt(deg_r), 0.0)
    inv_c = jnp.where(deg_c > 0, lax.rsqrt(deg_c), 0.0)
    a_hat = a * inv_r * inv_c

    def layer(h, idx, relu):
        w = slab_ref[idx * W_ROWS:(idx + 1) * W_ROWS, :]          # static (32, 128) slice
        b = slab_ref[BIAS_ROW0 + idx:BIAS_ROW0 + idx + 1, :]      # static (1, 128) slice
        y = jnp.dot(h[:, :W_ROWS], w, preferred_element_type=jnp.float32) + b
        return jnp.maximum(y, 0.0) if relu else y

    # ---- encoder MLPBlock (Linear -> ReLU -> [dropout=id] -> Linear) ----
    h = layer(x_ref[...], 0, relu=True)
    h = layer(h, 1, relu=False)

    # ---- GCNBlock: conv_depth x ( A_hat @ h @ W_d + b_d -> ReLU -> +residual ) ----
    for d in range(conv_depth):            # static unrolled loop (time_inv=False)
        hn = jnp.dot(a_hat, h, preferred_element_type=jnp.float32)
        hn = layer(hn, 2 + d, relu=True)   # linear=False -> ReLU
        h = hn + h                         # residual=True

    # ---- decoder MLPBlock (Linear -> ReLU -> Linear) ----
    h = layer(h, 2 + conv_depth, relu=True)
    o_ref[...] = layer(h, 3 + conv_depth, relu=False)     # unmasked 128-lane store


# ------------------------------ plain-JAX glue ---------------------------------
def pack_params(params):
    """Pack all 12 small tensors into ONE lane-dense f32 slab (weights + bias rows)."""
    def pad_w(w):   # (32, out) -> (32, 128)
        return jnp.zeros((W_ROWS, LANE), jnp.float32).at[:w.shape[0], :w.shape[1]].set(w)

    def pad_b(b):   # (1, out) -> (128,)
        return jnp.zeros((LANE,), jnp.float32).at[:b.shape[-1]].set(b.reshape(-1))

    ws = [params["enc_w1"], params["enc_w2"]] \
       + [params["gcn_w"][d] for d in range(CONV_DEPTH)] \
       + [params["dec_w1"], params["dec_w2"]]
    bs = [params["enc_b1"], params["enc_b2"]] \
       + [params["gcn_b"][d] for d in range(CONV_DEPTH)] \
       + [params["dec_b1"], params["dec_b2"]]

    w_block = jnp.concatenate([pad_w(w) for w in ws], axis=0)              # (192, 128)
    b_block = jnp.zeros((SLAB_ROWS - BIAS_ROW0, LANE), jnp.float32) \
                 .at[:NUM_LAYERS].set(jnp.stack([pad_b(b) for b in bs], 0))  # (8, 128)
    return jnp.concatenate([w_block, b_block], axis=0)                      # (200, 128)


@jax.jit
def gcn_forward(edge_index, x, slab):
    n, in_dim = x.shape
    n_edges = edge_index.shape[1]

    # Advisory cost estimate using the real (unpadded) work.
    flops = 2 * (2 * n * in_dim * HIDDEN_DIM
                 + CONV_DEPTH * (n * n * HIDDEN_DIM + n * HIDDEN_DIM * HIDDEN_DIM)
                 + n * HIDDEN_DIM * HIDDEN_DIM + n * HIDDEN_DIM * OUTPUT_DIM)
    bytes_accessed = 4 * (x.size + slab.size + n * LANE + edge_index.size)

    out_pad = pl.pallas_call(
        functools.partial(gcn_forward_kernel, CONV_DEPTH, n_edges),
        out_shape=jax.ShapeDtypeStruct((n, LANE), jnp.float32),
        grid_spec=pltpu.PrefetchScalarGridSpec(
            num_scalar_prefetch=1,          # edge_index -> SMEM
            grid=(1,),
            in_specs=[pl.BlockSpec((n, in_dim), lambda i, e: (0, 0)),
                      pl.BlockSpec((SLAB_ROWS, LANE), lambda i, e: (0, 0))],
            out_specs=pl.BlockSpec((n, LANE), lambda i, e: (0, 0)),
        ),
        compiler_params=pltpu.CompilerParams(dimension_semantics=("arbitrary",)),
        cost_estimate=pl.CostEstimate(flops=flops, transcendentals=2 * n,
                                      bytes_accessed=bytes_accessed),
    )(edge_index, x, slab)
    return out_pad[:, :OUTPUT_DIM]


def gcn_reference(x, edge_index, params):
    """Pure-JAX reference (unpadded) for correctness checking."""
    n = x.shape[0]
    src, dst = edge_index[0], edge_index[1]
    a = jnp.zeros((n, n), jnp.float32).at[src, dst].set(1.0)
    a = jnp.maximum(a, a.T)                                          # symmetrize
    a = jnp.minimum(a + jnp.eye(n, dtype=jnp.float32), 1.0)          # self loops (clamped)
    deg = a.sum(axis=1)
    dis = jnp.where(deg > 0, 1.0 / jnp.sqrt(deg), 0.0)
    a_hat = a * dis[:, None] * dis[None, :]

    h = jnp.maximum(x @ params["enc_w1"] + params["enc_b1"], 0.0)
    h = h @ params["enc_w2"] + params["enc_b2"]
    for d in range(CONV_DEPTH):
        hn = jnp.maximum(a_hat @ h @ params["gcn_w"][d] + params["gcn_b"][d], 0.0)
        h = hn + h
    h = jnp.maximum(h @ params["dec_w1"] + params["dec_b1"], 0.0)
    return h @ params["dec_w2"] + params["dec_b2"]


def init_params(key):
    ks = jax.random.split(key, 12)
    s = 0.1
    return {
        "enc_w1": s * jax.random.normal(ks[0], (INPUT_DIM, HIDDEN_DIM), jnp.float32),
        "enc_b1": s * jax.random.normal(ks[1], (1, HIDDEN_DIM), jnp.float32),
        "enc_w2": s * jax.random.normal(ks[2], (HIDDEN_DIM, HIDDEN_DIM), jnp.float32),
        "enc_b2": s * jax.random.normal(ks[3], (1, HIDDEN_DIM), jnp.float32),
        "gcn_w":  s * jax.random.normal(ks[4], (CONV_DEPTH, HIDDEN_DIM, HIDDEN_DIM), jnp.float32),
        "gcn_b":  s * jax.random.normal(ks[5], (CONV_DEPTH, 1, HIDDEN_DIM), jnp.float32),
        "dec_w1": s * jax.random.normal(ks[6], (HIDDEN_DIM, HIDDEN_DIM), jnp.float32),
        "dec_b1": s * jax.random.normal(ks[7], (1, HIDDEN_DIM), jnp.float32),
        "dec_w2": s * jax.random.normal(ks[8], (HIDDEN_DIM, OUTPUT_DIM), jnp.float32),
        "dec_b2": s * jax.random.normal(ks[9], (1, OUTPUT_DIM), jnp.float32),
    }


if __name__ == "__main__":
    key = jax.random.PRNGKey(0)
    k_x, k_e, k_p = jax.random.split(key, 3)

    # Node features [N, input_dim]
    x = jax.random.normal(k_x, (N_NODES, INPUT_DIM), jnp.float32)

    # edge_index [2, E]: a ring graph plus a few random chords (deterministic)
    ring_src = jnp.arange(N_NODES, dtype=jnp.int32)
    ring_dst = (ring_src + 1) % N_NODES
    extra = jax.random.randint(k_e, (2, 8), 0, N_NODES, dtype=jnp.int32)
    edge_index = jnp.concatenate([jnp.stack([ring_src, ring_dst]), extra], axis=1)

    params = init_params(k_p)
    slab = pack_params(params)                 # done once, outside the hot path

    out = gcn_forward(edge_index, x, slab)
    jax.block_until_ready(out)
    assert out.shape == (N_NODES, OUTPUT_DIM)

    ref = gcn_reference(x, edge_index, params)
    assert jnp.allclose(out, ref, rtol=1e-4, atol=1e-4), "kernel/reference mismatch"

    print("KERNEL_OK")
</pallas_src>

<mosaic_0001>
module attributes {stable_mosaic.version = 11 : i64} {
  func.func @gcn_forward_kernel(%arg0: i32, %arg1: memref<2x24xi32, #tpu.memory_space<smem>>, %arg2: memref<16x32xf32, #tpu.memory_space<vmem>>, %arg3: memref<200x128xf32, #tpu.memory_space<vmem>>, %arg4: memref<16x128xf32, #tpu.memory_space<vmem>>) attributes {dimension_semantics = [#tpu.dimension_semantics<arbitrary>], iteration_bounds = array<i64: 1>, scalar_prefetch = 1 : i64, scratch_operands = 0 : i64, tpu.core_type = #tpu.core_type<tc>, window_params = [{pipeline_mode = #tpu.pipeline_mode<synchronous>, transform_indices = @transform_0, window_bounds = array<i64: 16, 32>}, {pipeline_mode = #tpu.pipeline_mode<synchronous>, transform_indices = @transform_1, window_bounds = array<i64: 200, 128>}, {pipeline_mode = #tpu.pipeline_mode<synchronous>, transform_indices = @transform_2, window_bounds = array<i64: 16, 128>}]} {
    %0 = tpu.iota {dimensions = array<i32: 0>} : vector<16x16xi32>
    %1 = tpu.iota {dimensions = array<i32: 1>} : vector<16x16xi32>
    %2 = arith.cmpi eq, %0, %1 : vector<16x16xi32>
    %c0 = arith.constant 0 : index
    %c0_0 = arith.constant 0 : index
    %3 = memref.load %arg1[%c0, %c0_0] : memref<2x24xi32, #tpu.memory_space<smem>>
    %c1 = arith.constant 1 : index
    %c0_1 = arith.constant 0 : index
    %4 = memref.load %arg1[%c1, %c0_1] : memref<2x24xi32, #tpu.memory_space<smem>>
    %5 = vector.broadcast %3 : i32 to vector<16x16xi32>
    %6 = arith.cmpi eq, %0, %5 : vector<16x16xi32>
    %7 = vector.broadcast %4 : i32 to vector<16x16xi32>
    %8 = arith.cmpi eq, %1, %7 : vector<16x16xi32>
    %9 = arith.andi %6, %8 : vector<16x16xi1>
    %10 = arith.ori %2, %9 : vector<16x16xi1>
    %11 = vector.broadcast %4 : i32 to vector<16x16xi32>
    %12 = arith.cmpi eq, %0, %11 : vector<16x16xi32>
    %13 = vector.broadcast %3 : i32 to vector<16x16xi32>
    %14 = arith.cmpi eq, %1, %13 : vector<16x16xi32>
    %15 = arith.andi %12, %14 : vector<16x16xi1>
    %16 = arith.ori %10, %15 : vector<16x16xi1>
    %c0_2 = arith.constant 0 : index
    %c1_3 = arith.constant 1 : index
    %17 = memref.load %arg1[%c0_2, %c1_3] : memref<2x24xi32, #tpu.memory_space<smem>>
    %c1_4 = arith.constant 1 : index
    %c1_5 = arith.constant 1 : index
    %18 = memref.load %arg1[%c1_4, %c1_5] : memref<2x24xi32, #tpu.memory_space<smem>>
    %19 = vector.broadcast %17 : i32 to vector<16x16xi32>
    %20 = arith.cmpi eq, %0, %19 : vector<16x16xi32>
    %21 = vector.broadcast %18 : i32 to vector<16x16xi32>
    %22 = arith.cmpi eq, %1, %21 : vector<16x16xi32>
    %23 = arith.andi %20, %22 : vector<16x16xi1>
    %24 = arith.ori %16, %23 : vector<16x16xi1>
    %25 = vector.broadcast %18 : i32 to vector<16x16xi32>
    %26 = arith.cmpi eq, %0, %25 : vector<16x16xi32>
    %27 = vector.broadcast %17 : i32 to vector<16x16xi32>
    %28 = arith.cmpi eq, %1, %27 : vector<16x16xi32>
    %29 = arith.andi %26, %28 : vector<16x16xi1>
    %30 = arith.ori %24, %29 : vector<16x16xi1>
    %c0_6 = arith.constant 0 : index
    %c2 = arith.constant 2 : index
    %31 = memref.load %arg1[%c0_6, %c2] : memref<2x24xi32, #tpu.memory_space<smem>>
    %c1_7 = arith.constant 1 : index
    %c2_8 = arith.constant 2 : index
    %32 = memref.load %arg1[%c1_7, %c2_8] : memref<2x24xi32, #tpu.memory_space<smem>>
    %33 = vector.broadcast %31 : i32 to vector<16x16xi32>
    %34 = arith.cmpi eq, %0, %33 : vector<16x16xi32>
    %35 = vector.broadcast %32 : i32 to vector<16x16xi32>
    %36 = arith.cmpi eq, %1, %35 : vector<16x16xi32>
    %37 = arith.andi %34, %36 : vector<16x16xi1>
    %38 = arith.ori %30, %37 : vector<16x16xi1>
    %39 = vector.broadcast %32 : i32 to vector<16x16xi32>
    %40 = arith.cmpi eq, %0, %39 : vector<16x16xi32>
    %41 = vector.broadcast %31 : i32 to vector<16x16xi32>
    %42 = arith.cmpi eq, %1, %41 : vector<16x16xi32>
    %43 = arith.andi %40, %42 : vector<16x16xi1>
    %44 = arith.ori %38, %43 : vector<16x16xi1>
    %c0_9 = arith.constant 0 : index
    %c3 = arith.constant 3 : index
    %45 = memref.load %arg1[%c0_9, %c3] : memref<2x24xi32, #tpu.memory_space<smem>>
    %c1_10 = arith.constant 1 : index
    %c3_11 = arith.constant 3 : index
    %46 = memref.load %arg1[%c1_10, %c3_11] : memref<2x24xi32, #tpu.memory_space<smem>>
    %47 = vector.broadcast %45 : i32 to vector<16x16xi32>
    %48 = arith.cmpi eq, %0, %47 : vector<16x16xi32>
    %49 = vector.broadcast %46 : i32 to vector<16x16xi32>
    %50 = arith.cmpi eq, %1, %49 : vector<16x16xi32>
    %51 = arith.andi %48, %50 : vector<16x16xi1>
    %52 = arith.ori %44, %51 : vector<16x16xi1>
    %53 = vector.broadcast %46 : i32 to vector<16x16xi32>
    %54 = arith.cmpi eq, %0, %53 : vector<16x16xi32>
    %55 = vector.broadcast %45 : i32 to vector<16x16xi32>
    %56 = arith.cmpi eq, %1, %55 : vector<16x16xi32>
    %57 = arith.andi %54, %56 : vector<16x16xi1>
    %58 = arith.ori %52, %57 : vector<16x16xi1>
    %c0_12 = arith.constant 0 : index
    %c4 = arith.constant 4 : index
    %59 = memref.load %arg1[%c0_12, %c4] : memref<2x24xi32, #tpu.memory_space<smem>>
    %c1_13 = arith.constant 1 : index
    %c4_14 = arith.constant 4 : index
    %60 = memref.load %arg1[%c1_13, %c4_14] : memref<2x24xi32, #tpu.memory_space<smem>>
    %61 = vector.broadcast %59 : i32 to vector<16x16xi32>
    %62 = arith.cmpi eq, %0, %61 : vector<16x16xi32>
    %63 = vector.broadcast %60 : i32 to vector<16x16xi32>
    %64 = arith.cmpi eq, %1, %63 : vector<16x16xi32>
    %65 = arith.andi %62, %64 : vector<16x16xi1>
    %66 = arith.ori %58, %65 : vector<16x16xi1>
    %67 = vector.broadcast %60 : i32 to vector<16x16xi32>
    %68 = arith.cmpi eq, %0, %67 : vector<16x16xi32>
    %69 = vector.broadcast %59 : i32 to vector<16x16xi32>
    %70 = arith.cmpi eq, %1, %69 : vector<16x16xi32>
    %71 = arith.andi %68, %70 : vector<16x16xi1>
    %72 = arith.ori %66, %71 : vector<16x16xi1>
    %c0_15 = arith.constant 0 : index
    %c5 = arith.constant 5 : index
    %73 = memref.load %arg1[%c0_15, %c5] : memref<2x24xi32, #tpu.memory_space<smem>>
    %c1_16 = arith.constant 1 : index
    %c5_17 = arith.constant 5 : index
    %74 = memref.load %arg1[%c1_16, %c5_17] : memref<2x24xi32, #tpu.memory_space<smem>>
    %75 = vector.broadcast %73 : i32 to vector<16x16xi32>
    %76 = arith.cmpi eq, %0, %75 : vector<16x16xi32>
    %77 = vector.broadcast %74 : i32 to vector<16x16xi32>
    %78 = arith.cmpi eq, %1, %77 : vector<16x16xi32>
    %79 = arith.andi %76, %78 : vector<16x16xi1>
    %80 = arith.ori %72, %79 : vector<16x16xi1>
    %81 = vector.broadcast %74 : i32 to vector<16x16xi32>
    %82 = arith.cmpi eq, %0, %81 : vector<16x16xi32>
    %83 = vector.broadcast %73 : i32 to vector<16x16xi32>
    %84 = arith.cmpi eq, %1, %83 : vector<16x16xi32>
    %85 = arith.andi %82, %84 : vector<16x16xi1>
    %86 = arith.ori %80, %85 : vector<16x16xi1>
    %c0_18 = arith.constant 0 : index
    %c6 = arith.constant 6 : index
    %87 = memref.load %arg1[%c0_18, %c6] : memref<2x24xi32, #tpu.memory_space<smem>>
    %c1_19 = arith.constant 1 : index
    %c6_20 = arith.constant 6 : index
    %88 = memref.load %arg1[%c1_19, %c6_20] : memref<2x24xi32, #tpu.memory_space<smem>>
    %89 = vector.broadcast %87 : i32 to vector<16x16xi32>
    %90 = arith.cmpi eq, %0, %89 : vector<16x16xi32>
    %91 = vector.broadcast %88 : i32 to vector<16x16xi32>
    %92 = arith.cmpi eq, %1, %91 : vector<16x16xi32>
    %93 = arith.andi %90, %92 : vector<16x16xi1>
    %94 = arith.ori %86, %93 : vector<16x16xi1>
    %95 = vector.broadcast %88 : i32 to vector<16x16xi32>
    %96 = arith.cmpi eq, %0, %95 : vector<16x16xi32>
    %97 = vector.broadcast %87 : i32 to vector<16x16xi32>
    %98 = arith.cmpi eq, %1, %97 : vector<16x16xi32>
    %99 = arith.andi %96, %98 : vector<16x16xi1>
    %100 = arith.ori %94, %99 : vector<16x16xi1>
    %c0_21 = arith.constant 0 : index
    %c7 = arith.constant 7 : index
    %101 = memref.load %arg1[%c0_21, %c7] : memref<2x24xi32, #tpu.memory_space<smem>>
    %c1_22 = arith.constant 1 : index
    %c7_23 = arith.constant 7 : index
    %102 = memref.load %arg1[%c1_22, %c7_23] : memref<2x24xi32, #tpu.memory_space<smem>>
    %103 = vector.broadcast %101 : i32 to vector<16x16xi32>
    %104 = arith.cmpi eq, %0, %103 : vector<16x16xi32>
    %105 = vector.broadcast %102 : i32 to vector<16x16xi32>
    %106 = arith.cmpi eq, %1, %105 : vector<16x16xi32>
    %107 = arith.andi %104, %106 : vector<16x16xi1>
    %108 = arith.ori %100, %107 : vector<16x16xi1>
    %109 = vector.broadcast %102 : i32 to vector<16x16xi32>
    %110 = arith.cmpi eq, %0, %109 : vector<16x16xi32>
    %111 = vector.broadcast %101 : i32 to vector<16x16xi32>
    %112 = arith.cmpi eq, %1, %111 : vector<16x16xi32>
    %113 = arith.andi %110, %112 : vector<16x16xi1>
    %114 = arith.ori %108, %113 : vector<16x16xi1>
    %c0_24 = arith.constant 0 : index
    %c8 = arith.constant 8 : index
    %115 = memref.load %arg1[%c0_24, %c8] : memref<2x24xi32, #tpu.memory_space<smem>>
    %c1_25 = arith.constant 1 : index
    %c8_26 = arith.constant 8 : index
    %116 = memref.load %arg1[%c1_25, %c8_26] : memref<2x24xi32, #tpu.memory_space<smem>>
    %117 = vector.broadcast %115 : i32 to vector<16x16xi32>
    %118 = arith.cmpi eq, %0, %117 : vector<16x16xi32>
    %119 = vector.broadcast %116 : i32 to vector<16x16xi32>
    %120 = arith.cmpi eq, %1, %119 : vector<16x16xi32>
    %121 = arith.andi %118, %120 : vector<16x16xi1>
    %122 = arith.ori %114, %121 : vector<16x16xi1>
    %123 = vector.broadcast %116 : i32 to vector<16x16xi32>
    %124 = arith.cmpi eq, %0, %123 : vector<16x16xi32>
    %125 = vector.broadcast %115 : i32 to vector<16x16xi32>
    %126 = arith.cmpi eq, %1, %125 : vector<16x16xi32>
    %127 = arith.andi %124, %126 : vector<16x16xi1>
    %128 = arith.ori %122, %127 : vector<16x16xi1>
    %c0_27 = arith.constant 0 : index
    %c9 = arith.constant 9 : index
    %129 = memref.load %arg1[%c0_27, %c9] : memref<2x24xi32, #tpu.memory_space<smem>>
    %c1_28 = arith.constant 1 : index
    %c9_29 = arith.constant 9 : index
    %130 = memref.load %arg1[%c1_28, %c9_29] : memref<2x24xi32, #tpu.memory_space<smem>>
    %131 = vector.broadcast %129 : i32 to vector<16x16xi32>
    %132 = arith.cmpi eq, %0, %131 : vector<16x16xi32>
    %133 = vector.broadcast %130 : i32 to vector<16x16xi32>
    %134 = arith.cmpi eq, %1, %133 : vector<16x16xi32>
    %135 = arith.andi %132, %134 : vector<16x16xi1>
    %136 = arith.ori %128, %135 : vector<16x16xi1>
    %137 = vector.broadcast %130 : i32 to vector<16x16xi32>
    %138 = arith.cmpi eq, %0, %137 : vector<16x16xi32>
    %139 = vector.broadcast %129 : i32 to vector<16x16xi32>
    %140 = arith.cmpi eq, %1, %139 : vector<16x16xi32>
    %141 = arith.andi %138, %140 : vector<16x16xi1>
    %142 = arith.ori %136, %141 : vector<16x16xi1>
    %c0_30 = arith.constant 0 : index
    %c10 = arith.constant 10 : index
    %143 = memref.load %arg1[%c0_30, %c10] : memref<2x24xi32, #tpu.memory_space<smem>>
    %c1_31 = arith.constant 1 : index
    %c10_32 = arith.constant 10 : index
    %144 = memref.load %arg1[%c1_31, %c10_32] : memref<2x24xi32, #tpu.memory_space<smem>>
    %145 = vector.broadcast %143 : i32 to vector<16x16xi32>
    %146 = arith.cmpi eq, %0, %145 : vector<16x16xi32>
    %147 = vector.broadcast %144 : i32 to vector<16x16xi32>
    %148 = arith.cmpi eq, %1, %147 : vector<16x16xi32>
    %149 = arith.andi %146, %148 : vector<16x16xi1>
    %150 = arith.ori %142, %149 : vector<16x16xi1>
    %151 = vector.broadcast %144 : i32 to vector<16x16xi32>
    %152 = arith.cmpi eq, %0, %151 : vector<16x16xi32>
    %153 = vector.broadcast %143 : i32 to vector<16x16xi32>
    %154 = arith.cmpi eq, %1, %153 : vector<16x16xi32>
    %155 = arith.andi %152, %154 : vector<16x16xi1>
    %156 = arith.ori %150, %155 : vector<16x16xi1>
    %c0_33 = arith.constant 0 : index
    %c11 = arith.constant 11 : index
    %157 = memref.load %arg1[%c0_33, %c11] : memref<2x24xi32, #tpu.memory_space<smem>>
    %c1_34 = arith.constant 1 : index
    %c11_35 = arith.constant 11 : index
    %158 = memref.load %arg1[%c1_34, %c11_35] : memref<2x24xi32, #tpu.memory_space<smem>>
    %159 = vector.broadcast %157 : i32 to vector<16x16xi32>
    %160 = arith.cmpi eq, %0, %159 : vector<16x16xi32>
    %161 = vector.broadcast %158 : i32 to vector<16x16xi32>
    %162 = arith.cmpi eq, %1, %161 : vector<16x16xi32>
    %163 = arith.andi %160, %162 : vector<16x16xi1>
    %164 = arith.ori %156, %163 : vector<16x16xi1>
    %165 = vector.broadcast %158 : i32 to vector<16x16xi32>
    %166 = arith.cmpi eq, %0, %165 : vector<16x16xi32>
    %167 = vector.broadcast %157 : i32 to vector<16x16xi32>
    %168 = arith.cmpi eq, %1, %167 : vector<16x16xi32>
    %169 = arith.andi %166, %168 : vector<16x16xi1>
    %170 = arith.ori %164, %169 : vector<16x16xi1>
    %c0_36 = arith.constant 0 : index
    %c12 = arith.constant 12 : index
    %171 = memref.load %arg1[%c0_36, %c12] : memref<2x24xi32, #tpu.memory_space<smem>>
    %c1_37 = arith.constant 1 : index
    %c12_38 = arith.constant 12 : index
    %172 = memref.load %arg1[%c1_37, %c12_38] : memref<2x24xi32, #tpu.memory_space<smem>>
    %173 = vector.broadcast %171 : i32 to vector<16x16xi32>
    %174 = arith.cmpi eq, %0, %173 : vector<16x16xi32>
    %175 = vector.broadcast %172 : i32 to vector<16x16xi32>
    %176 = arith.cmpi eq, %1, %175 : vector<16x16xi32>
    %177 = arith.andi %174, %176 : vector<16x16xi1>
    %178 = arith.ori %170, %177 : vector<16x16xi1>
    %179 = vector.broadcast %172 : i32 to vector<16x16xi32>
    %180 = arith.cmpi eq, %0, %179 : vector<16x16xi32>
    %181 = vector.broadcast %171 : i32 to vector<16x16xi32>
    %182 = arith.cmpi eq, %1, %181 : vector<16x16xi32>
    %183 = arith.andi %180, %182 : vector<16x16xi1>
    %184 = arith.ori %178, %183 : vector<16x16xi1>
    %c0_39 = arith.constant 0 : index
    %c13 = arith.constant 13 : index
    %185 = memref.load %arg1[%c0_39, %c13] : memref<2x24xi32, #tpu.memory_space<smem>>
    %c1_40 = arith.constant 1 : index
    %c13_41 = arith.constant 13 : index
    %186 = memref.load %arg1[%c1_40, %c13_41] : memref<2x24xi32, #tpu.memory_space<smem>>
    %187 = vector.broadcast %185 : i32 to vector<16x16xi32>
    %188 = arith.cmpi eq, %0, %187 : vector<16x16xi32>
    %189 = vector.broadcast %186 : i32 to vector<16x16xi32>
    %190 = arith.cmpi eq, %1, %189 : vector<16x16xi32>
    %191 = arith.andi %188, %190 : vector<16x16xi1>
    %192 = arith.ori %184, %191 : vector<16x16xi1>
    %193 = vector.broadcast %186 : i32 to vector<16x16xi32>
    %194 = arith.cmpi eq, %0, %193 : vector<16x16xi32>
    %195 = vector.broadcast %185 : i32 to vector<16x16xi32>
    %196 = arith.cmpi eq, %1, %195 : vector<16x16xi32>
    %197 = arith.andi %194, %196 : vector<16x16xi1>
    %198 = arith.ori %192, %197 : vector<16x16xi1>
    %c0_42 = arith.constant 0 : index
    %c14 = arith.constant 14 : index
    %199 = memref.load %arg1[%c0_42, %c14] : memref<2x24xi32, #tpu.memory_space<smem>>
    %c1_43 = arith.constant 1 : index
    %c14_44 = arith.constant 14 : index
    %200 = memref.load %arg1[%c1_43, %c14_44] : memref<2x24xi32, #tpu.memory_space<smem>>
    %201 = vector.broadcast %199 : i32 to vector<16x16xi32>
    %202 = arith.cmpi eq, %0, %201 : vector<16x16xi32>
    %203 = vector.broadcast %200 : i32 to vector<16x16xi32>
    %204 = arith.cmpi eq, %1, %203 : vector<16x16xi32>
    %205 = arith.andi %202, %204 : vector<16x16xi1>
    %206 = arith.ori %198, %205 : vector<16x16xi1>
    %207 = vector.broadcast %200 : i32 to vector<16x16xi32>
    %208 = arith.cmpi eq, %0, %207 : vector<16x16xi32>
    %209 = vector.broadcast %199 : i32 to vector<16x16xi32>
    %210 = arith.cmpi eq, %1, %209 : vector<16x16xi32>
    %211 = arith.andi %208, %210 : vector<16x16xi1>
    %212 = arith.ori %206, %211 : vector<16x16xi1>
    %c0_45 = arith.constant 0 : index
    %c15 = arith.constant 15 : index
    %213 = memref.load %arg1[%c0_45, %c15] : memref<2x24xi32, #tpu.memory_space<smem>>
    %c1_46 = arith.constant 1 : index
    %c15_47 = arith.constant 15 : index
    %214 = memref.load %arg1[%c1_46, %c15_47] : memref<2x24xi32, #tpu.memory_space<smem>>
    %215 = vector.broadcast %213 : i32 to vector<16x16xi32>
    %216 = arith.cmpi eq, %0, %215 : vector<16x16xi32>
    %217 = vector.broadcast %214 : i32 to vector<16x16xi32>
    %218 = arith.cmpi eq, %1, %217 : vector<16x16xi32>
    %219 = arith.andi %216, %218 : vector<16x16xi1>
    %220 = arith.ori %212, %219 : vector<16x16xi1>
    %221 = vector.broadcast %214 : i32 to vector<16x16xi32>
    %222 = arith.cmpi eq, %0, %221 : vector<16x16xi32>
    %223 = vector.broadcast %213 : i32 to vector<16x16xi32>
    %224 = arith.cmpi eq, %1, %223 : vector<16x16xi32>
    %225 = arith.andi %222, %224 : vector<16x16xi1>
    %226 = arith.ori %220, %225 : vector<16x16xi1>
    %c0_48 = arith.constant 0 : index
    %c16 = arith.constant 16 : index
    %227 = memref.load %arg1[%c0_48, %c16] : memref<2x24xi32, #tpu.memory_space<smem>>
    %c1_49 = arith.constant 1 : index
    %c16_50 = arith.constant 16 : index
    %228 = memref.load %arg1[%c1_49, %c16_50] : memref<2x24xi32, #tpu.memory_space<smem>>
    %229 = vector.broadcast %227 : i32 to vector<16x16xi32>
    %230 = arith.cmpi eq, %0, %229 : vector<16x16xi32>
    %231 = vector.broadcast %228 : i32 to vector<16x16xi32>
    %232 = arith.cmpi eq, %1, %231 : vector<16x16xi32>
    %233 = arith.andi %230, %232 : vector<16x16xi1>
    %234 = arith.ori %226, %233 : vector<16x16xi1>
    %235 = vector.broadcast %228 : i32 to vector<16x16xi32>
    %236 = arith.cmpi eq, %0, %235 : vector<16x16xi32>
    %237 = vector.broadcast %227 : i32 to vector<16x16xi32>
    %238 = arith.cmpi eq, %1, %237 : vector<16x16xi32>
    %239 = arith.andi %236, %238 : vector<16x16xi1>
    %240 = arith.ori %234, %239 : vector<16x16xi1>
    %c0_51 = arith.constant 0 : index
    %c17 = arith.constant 17 : index
    %241 = memref.load %arg1[%c0_51, %c17] : memref<2x24xi32, #tpu.memory_space<smem>>
    %c1_52 = arith.constant 1 : index
    %c17_53 = arith.constant 17 : index
    %242 = memref.load %arg1[%c1_52, %c17_53] : memref<2x24xi32, #tpu.memory_space<smem>>
    %243 = vector.broadcast %241 : i32 to vector<16x16xi32>
    %244 = arith.cmpi eq, %0, %243 : vector<16x16xi32>
    %245 = vector.broadcast %242 : i32 to vector<16x16xi32>
    %246 = arith.cmpi eq, %1, %245 : vector<16x16xi32>
    %247 = arith.andi %244, %246 : vector<16x16xi1>
    %248 = arith.ori %240, %247 : vector<16x16xi1>
    %249 = vector.broadcast %242 : i32 to vector<16x16xi32>
    %250 = arith.cmpi eq, %0, %249 : vector<16x16xi32>
    %251 = vector.broadcast %241 : i32 to vector<16x16xi32>
    %252 = arith.cmpi eq, %1, %251 : vector<16x16xi32>
    %253 = arith.andi %250, %252 : vector<16x16xi1>
    %254 = arith.ori %248, %253 : vector<16x16xi1>
    %c0_54 = arith.constant 0 : index
    %c18 = arith.constant 18 : index
    %255 = memref.load %arg1[%c0_54, %c18] : memref<2x24xi32, #tpu.memory_space<smem>>
    %c1_55 = arith.constant 1 : index
    %c18_56 = arith.constant 18 : index
    %256 = memref.load %arg1[%c1_55, %c18_56] : memref<2x24xi32, #tpu.memory_space<smem>>
    %257 = vector.broadcast %255 : i32 to vector<16x16xi32>
    %258 = arith.cmpi eq, %0, %257 : vector<16x16xi32>
    %259 = vector.broadcast %256 : i32 to vector<16x16xi32>
    %260 = arith.cmpi eq, %1, %259 : vector<16x16xi32>
    %261 = arith.andi %258, %260 : vector<16x16xi1>
    %262 = arith.ori %254, %261 : vector<16x16xi1>
    %263 = vector.broadcast %256 : i32 to vector<16x16xi32>
    %264 = arith.cmpi eq, %0, %263 : vector<16x16xi32>
    %265 = vector.broadcast %255 : i32 to vector<16x16xi32>
    %266 = arith.cmpi eq, %1, %265 : vector<16x16xi32>
    %267 = arith.andi %264, %266 : vector<16x16xi1>
    %268 = arith.ori %262, %267 : vector<16x16xi1>
    %c0_57 = arith.constant 0 : index
    %c19 = arith.constant 19 : index
    %269 = memref.load %arg1[%c0_57, %c19] : memref<2x24xi32, #tpu.memory_space<smem>>
    %c1_58 = arith.constant 1 : index
    %c19_59 = arith.constant 19 : index
    %270 = memref.load %arg1[%c1_58, %c19_59] : memref<2x24xi32, #tpu.memory_space<smem>>
    %271 = vector.broadcast %269 : i32 to vector<16x16xi32>
    %272 = arith.cmpi eq, %0, %271 : vector<16x16xi32>
    %273 = vector.broadcast %270 : i32 to vector<16x16xi32>
    %274 = arith.cmpi eq, %1, %273 : vector<16x16xi32>
    %275 = arith.andi %272, %274 : vector<16x16xi1>
    %276 = arith.ori %268, %275 : vector<16x16xi1>
    %277 = vector.broadcast %270 : i32 to vector<16x16xi32>
    %278 = arith.cmpi eq, %0, %277 : vector<16x16xi32>
    %279 = vector.broadcast %269 : i32 to vector<16x16xi32>
    %280 = arith.cmpi eq, %1, %279 : vector<16x16xi32>
    %281 = arith.andi %278, %280 : vector<16x16xi1>
    %282 = arith.ori %276, %281 : vector<16x16xi1>
    %c0_60 = arith.constant 0 : index
    %c20 = arith.constant 20 : index
    %283 = memref.load %arg1[%c0_60, %c20] : memref<2x24xi32, #tpu.memory_space<smem>>
    %c1_61 = arith.constant 1 : index
    %c20_62 = arith.constant 20 : index
    %284 = memref.load %arg1[%c1_61, %c20_62] : memref<2x24xi32, #tpu.memory_space<smem>>
    %285 = vector.broadcast %283 : i32 to vector<16x16xi32>
    %286 = arith.cmpi eq, %0, %285 : vector<16x16xi32>
    %287 = vector.broadcast %284 : i32 to vector<16x16xi32>
    %288 = arith.cmpi eq, %1, %287 : vector<16x16xi32>
    %289 = arith.andi %286, %288 : vector<16x16xi1>
    %290 = arith.ori %282, %289 : vector<16x16xi1>
    %291 = vector.broadcast %284 : i32 to vector<16x16xi32>
    %292 = arith.cmpi eq, %0, %291 : vector<16x16xi32>
    %293 = vector.broadcast %283 : i32 to vector<16x16xi32>
    %294 = arith.cmpi eq, %1, %293 : vector<16x16xi32>
    %295 = arith.andi %292, %294 : vector<16x16xi1>
    %296 = arith.ori %290, %295 : vector<16x16xi1>
    %c0_63 = arith.constant 0 : index
    %c21 = arith.constant 21 : index
    %297 = memref.load %arg1[%c0_63, %c21] : memref<2x24xi32, #tpu.memory_space<smem>>
    %c1_64 = arith.constant 1 : index
    %c21_65 = arith.constant 21 : index
    %298 = memref.load %arg1[%c1_64, %c21_65] : memref<2x24xi32, #tpu.memory_space<smem>>
    %299 = vector.broadcast %297 : i32 to vector<16x16xi32>
    %300 = arith.cmpi eq, %0, %299 : vector<16x16xi32>
    %301 = vector.broadcast %298 : i32 to vector<16x16xi32>
    %302 = arith.cmpi eq, %1, %301 : vector<16x16xi32>
    %303 = arith.andi %300, %302 : vector<16x16xi1>
    %304 = arith.ori %296, %303 : vector<16x16xi1>
    %305 = vector.broadcast %298 : i32 to vector<16x16xi32>
    %306 = arith.cmpi eq, %0, %305 : vector<16x16xi32>
    %307 = vector.broadcast %297 : i32 to vector<16x16xi32>
    %308 = arith.cmpi eq, %1, %307 : vector<16x16xi32>
    %309 = arith.andi %306, %308 : vector<16x16xi1>
    %310 = arith.ori %304, %309 : vector<16x16xi1>
    %c0_66 = arith.constant 0 : index
    %c22 = arith.constant 22 : index
    %311 = memref.load %arg1[%c0_66, %c22] : memref<2x24xi32, #tpu.memory_space<smem>>
    %c1_67 = arith.constant 1 : index
    %c22_68 = arith.constant 22 : index
    %312 = memref.load %arg1[%c1_67, %c22_68] : memref<2x24xi32, #tpu.memory_space<smem>>
    %313 = vector.broadcast %311 : i32 to vector<16x16xi32>
    %314 = arith.cmpi eq, %0, %313 : vector<16x16xi32>
    %315 = vector.broadcast %312 : i32 to vector<16x16xi32>
    %316 = arith.cmpi eq, %1, %315 : vector<16x16xi32>
    %317 = arith.andi %314, %316 : vector<16x16xi1>
    %318 = arith.ori %310, %317 : vector<16x16xi1>
    %319 = vector.broadcast %312 : i32 to vector<16x16xi32>
    %320 = arith.cmpi eq, %0, %319 : vector<16x16xi32>
    %321 = vector.broadcast %311 : i32 to vector<16x16xi32>
    %322 = arith.cmpi eq, %1, %321 : vector<16x16xi32>
    %323 = arith.andi %320, %322 : vector<16x16xi1>
    %324 = arith.ori %318, %323 : vector<16x16xi1>
    %c0_69 = arith.constant 0 : index
    %c23 = arith.constant 23 : index
    %325 = memref.load %arg1[%c0_69, %c23] : memref<2x24xi32, #tpu.memory_space<smem>>
    %c1_70 = arith.constant 1 : index
    %c23_71 = arith.constant 23 : index
    %326 = memref.load %arg1[%c1_70, %c23_71] : memref<2x24xi32, #tpu.memory_space<smem>>
    %327 = vector.broadcast %325 : i32 to vector<16x16xi32>
    %328 = arith.cmpi eq, %0, %327 : vector<16x16xi32>
    %329 = vector.broadcast %326 : i32 to vector<16x16xi32>
    %330 = arith.cmpi eq, %1, %329 : vector<16x16xi32>
    %331 = arith.andi %328, %330 : vector<16x16xi1>
    %332 = arith.ori %324, %331 : vector<16x16xi1>
    %333 = vector.broadcast %326 : i32 to vector<16x16xi32>
    %334 = arith.cmpi eq, %0, %333 : vector<16x16xi32>
    %335 = vector.broadcast %325 : i32 to vector<16x16xi32>
    %336 = arith.cmpi eq, %1, %335 : vector<16x16xi32>
    %337 = arith.andi %334, %336 : vector<16x16xi1>
    %338 = arith.ori %332, %337 : vector<16x16xi1>
    %339 = arith.extui %338 : vector<16x16xi1> to vector<16x16xi32>
    %340 = arith.sitofp %339 : vector<16x16xi32> to vector<16x16xf32>
    %cst = arith.constant dense<0.000000e+00> : vector<16xf32>
    %341 = vector.multi_reduction <add>, %340, %cst [1] : vector<16x16xf32> to vector<16xf32>
    %342 = vector.shape_cast %341 : vector<16xf32> to vector<16x1xf32>
    %cst_72 = arith.constant dense<0.000000e+00> : vector<16xf32>
    %343 = vector.multi_reduction <add>, %340, %cst_72 [0] : vector<16x16xf32> to vector<16xf32>
    %344 = vector.shape_cast %343 : vector<16xf32> to vector<1x16xf32>
    %cst_73 = arith.constant 0.000000e+00 : f32
    %345 = vector.broadcast %cst_73 : f32 to vector<16x1xf32>
    %346 = arith.cmpf ogt, %342, %345 : vector<16x1xf32>
    %347 = math.rsqrt %342 : vector<16x1xf32>
    %cst_74 = arith.constant 0.000000e+00 : f32
    %348 = vector.broadcast %cst_74 : f32 to vector<16x1xf32>
    %349 = arith.select %346, %347, %348 : vector<16x1xi1>, vector<16x1xf32>
    %cst_75 = arith.constant 0.000000e+00 : f32
    %350 = vector.broadcast %cst_75 : f32 to vector<1x16xf32>
    %351 = arith.cmpf ogt, %344, %350 : vector<1x16xf32>
    %352 = math.rsqrt %344 : vector<1x16xf32>
    %cst_76 = arith.constant 0.000000e+00 : f32
    %353 = vector.broadcast %cst_76 : f32 to vector<1x16xf32>
    %354 = arith.select %351, %352, %353 : vector<1x16xi1>, vector<1x16xf32>
    %355 = vector.broadcast %349 : vector<16x1xf32> to vector<16x16xf32>
    %356 = arith.mulf %340, %355 : vector<16x16xf32>
    %357 = vector.broadcast %354 : vector<1x16xf32> to vector<16x16xf32>
    %358 = arith.mulf %356, %357 : vector<16x16xf32>
    %c0_77 = arith.constant 0 : index
    %c0_78 = arith.constant 0 : index
    %359 = vector.load %arg2[%c0_77, %c0_78] : memref<16x32xf32, #tpu.memory_space<vmem>>, vector<16x32xf32>
    %c0_79 = arith.constant 0 : index
    %c0_80 = arith.constant 0 : index
    %360 = vector.load %arg3[%c0_79, %c0_80] : memref<200x128xf32, #tpu.memory_space<vmem>>, vector<32x128xf32>
    %c192 = arith.constant 192 : index
    %c0_81 = arith.constant 0 : index
    %361 = vector.load %arg3[%c192, %c0_81] : memref<200x128xf32, #tpu.memory_space<vmem>>, vector<1x128xf32>
    %cst_82 = arith.constant dense<0.000000e+00> : vector<16x128xf32>
    %362 = tpu.matmul %359, %360, %cst_82 {dimension_numbers = #tpu.dot_dimension_numbers<[1], [0], [0], [1], [0, 0, 1, 1], [], []>} : vector<16x32xf32>, vector<32x128xf32>, vector<16x128xf32> -> vector<16x128xf32>
    %363 = vector.broadcast %361 : vector<1x128xf32> to vector<16x128xf32>
    %364 = arith.addf %362, %363 : vector<16x128xf32>
    %cst_83 = arith.constant 0.000000e+00 : f32
    %365 = vector.broadcast %cst_83 : f32 to vector<16x128xf32>
    %366 = arith.maximumf %364, %365 : vector<16x128xf32>
    %c32 = arith.constant 32 : index
    %c0_84 = arith.constant 0 : index
    %367 = vector.load %arg3[%c32, %c0_84] : memref<200x128xf32, #tpu.memory_space<vmem>>, vector<32x128xf32>
    %c193 = arith.constant 193 : index
    %c0_85 = arith.constant 0 : index
    %368 = vector.load %arg3[%c193, %c0_85] : memref<200x128xf32, #tpu.memory_space<vmem>>, vector<1x128xf32>
    %369 = vector.extract_strided_slice %366 {offsets = [0, 0], sizes = [16, 32], strides = [1, 1]} : vector<16x128xf32> to vector<16x32xf32>
    %cst_86 = arith.constant dense<0.000000e+00> : vector<16x128xf32>
    %370 = tpu.matmul %369, %367, %cst_86 {dimension_numbers = #tpu.dot_dimension_numbers<[1], [0], [0], [1], [0, 0, 1, 1], [], []>} : vector<16x32xf32>, vector<32x128xf32>, vector<16x128xf32> -> vector<16x128xf32>
    %371 = vector.broadcast %368 : vector<1x128xf32> to vector<16x128xf32>
    %372 = arith.addf %370, %371 : vector<16x128xf32>
    %cst_87 = arith.constant dense<0.000000e+00> : vector<16x128xf32>
    %373 = tpu.matmul %358, %372, %cst_87 {dimension_numbers = #tpu.dot_dimension_numbers<[1], [0], [0], [1], [0, 0, 1, 1], [], []>} : vector<16x16xf32>, vector<16x128xf32>, vector<16x128xf32> -> vector<16x128xf32>
    %c64 = arith.constant 64 : index
    %c0_88 = arith.constant 0 : index
    %374 = vector.load %arg3[%c64, %c0_88] : memref<200x128xf32, #tpu.memory_space<vmem>>, vector<32x128xf32>
    %c194 = arith.constant 194 : index
    %c0_89 = arith.constant 0 : index
    %375 = vector.load %arg3[%c194, %c0_89] : memref<200x128xf32, #tpu.memory_space<vmem>>, vector<1x128xf32>
    %376 = vector.extract_strided_slice %373 {offsets = [0, 0], sizes = [16, 32], strides = [1, 1]} : vector<16x128xf32> to vector<16x32xf32>
    %cst_90 = arith.constant dense<0.000000e+00> : vector<16x128xf32>
    %377 = tpu.matmul %376, %374, %cst_90 {dimension_numbers = #tpu.dot_dimension_numbers<[1], [0], [0], [1], [0, 0, 1, 1], [], []>} : vector<16x32xf32>, vector<32x128xf32>, vector<16x128xf32> -> vector<16x128xf32>
    %378 = vector.broadcast %375 : vector<1x128xf32> to vector<16x128xf32>
    %379 = arith.addf %377, %378 : vector<16x128xf32>
    %cst_91 = arith.constant 0.000000e+00 : f32
    %380 = vector.broadcast %cst_91 : f32 to vector<16x128xf32>
    %381 = arith.maximumf %379, %380 : vector<16x128xf32>
    %382 = arith.addf %381, %372 : vector<16x128xf32>
    %cst_92 = arith.constant dense<0.000000e+00> : vector<16x128xf32>
    %383 = tpu.matmul %358, %382, %cst_92 {dimension_numbers = #tpu.dot_dimension_numbers<[1], [0], [0], [1], [0, 0, 1, 1], [], []>} : vector<16x16xf32>, vector<16x128xf32>, vector<16x128xf32> -> vector<16x128xf32>
    %c96 = arith.constant 96 : index
    %c0_93 = arith.constant 0 : index
    %384 = vector.load %arg3[%c96, %c0_93] : memref<200x128xf32, #tpu.memory_space<vmem>>, vector<32x128xf32>
    %c195 = arith.constant 195 : index
    %c0_94 = arith.constant 0 : index
    %385 = vector.load %arg3[%c195, %c0_94] : memref<200x128xf32, #tpu.memory_space<vmem>>, vector<1x128xf32>
    %386 = vector.extract_strided_slice %383 {offsets = [0, 0], sizes = [16, 32], strides = [1, 1]} : vector<16x128xf32> to vector<16x32xf32>
    %cst_95 = arith.constant dense<0.000000e+00> : vector<16x128xf32>
    %387 = tpu.matmul %386, %384, %cst_95 {dimension_numbers = #tpu.dot_dimension_numbers<[1], [0], [0], [1], [0, 0, 1, 1], [], []>} : vector<16x32xf32>, vector<32x128xf32>, vector<16x128xf32> -> vector<16x128xf32>
    %388 = vector.broadcast %385 : vector<1x128xf32> to vector<16x128xf32>
    %389 = arith.addf %387, %388 : vector<16x128xf32>
    %cst_96 = arith.constant 0.000000e+00 : f32
    %390 = vector.broadcast %cst_96 : f32 to vector<16x128xf32>
    %391 = arith.maximumf %389, %390 : vector<16x128xf32>
    %392 = arith.addf %391, %382 : vector<16x128xf32>
    %c128 = arith.constant 128 : index
    %c0_97 = arith.constant 0 : index
    %393 = vector.load %arg3[%c128, %c0_97] : memref<200x128xf32, #tpu.memory_space<vmem>>, vector<32x128xf32>
    %c196 = arith.constant 196 : index
    %c0_98 = arith.constant 0 : index
    %394 = vector.load %arg3[%c196, %c0_98] : memref<200x128xf32, #tpu.memory_space<vmem>>, vector<1x128xf32>
    %395 = vector.extract_strided_slice %392 {offsets = [0, 0], sizes = [16, 32], strides = [1, 1]} : vector<16x128xf32> to vector<16x32xf32>
    %cst_99 = arith.constant dense<0.000000e+00> : vector<16x128xf32>
    %396 = tpu.matmul %395, %393, %cst_99 {dimension_numbers = #tpu.dot_dimension_numbers<[1], [0], [0], [1], [0, 0, 1, 1], [], []>} : vector<16x32xf32>, vector<32x128xf32>, vector<16x128xf32> -> vector<16x128xf32>
    %397 = vector.broadcast %394 : vector<1x128xf32> to vector<16x128xf32>
    %398 = arith.addf %396, %397 : vector<16x128xf32>
    %cst_100 = arith.constant 0.000000e+00 : f32
    %399 = vector.broadcast %cst_100 : f32 to vector<16x128xf32>
    %400 = arith.maximumf %398, %399 : vector<16x128xf32>
    %c160 = arith.constant 160 : index
    %c0_101 = arith.constant 0 : index
    %401 = vector.load %arg3[%c160, %c0_101] : memref<200x128xf32, #tpu.memory_space<vmem>>, vector<32x128xf32>
    %c197 = arith.constant 197 : index
    %c0_102 = arith.constant 0 : index
    %402 = vector.load %arg3[%c197, %c0_102] : memref<200x128xf32, #tpu.memory_space<vmem>>, vector<1x128xf32>
    %403 = vector.extract_strided_slice %400 {offsets = [0, 0], sizes = [16, 32], strides = [1, 1]} : vector<16x128xf32> to vector<16x32xf32>
    %cst_103 = arith.constant dense<0.000000e+00> : vector<16x128xf32>
    %404 = tpu.matmul %403, %401, %cst_103 {dimension_numbers = #tpu.dot_dimension_numbers<[1], [0], [0], [1], [0, 0, 1, 1], [], []>} : vector<16x32xf32>, vector<32x128xf32>, vector<16x128xf32> -> vector<16x128xf32>
    %405 = vector.broadcast %402 : vector<1x128xf32> to vector<16x128xf32>
    %406 = arith.addf %404, %405 : vector<16x128xf32>
    %c0_104 = arith.constant 0 : index
    %c0_105 = arith.constant 0 : index
    %407 = vector.load %arg4[%c0_104, %c0_105] : memref<16x128xf32, #tpu.memory_space<vmem>>, vector<16x128xf32>
    tpu.vector_store %arg4[%c0_104, %c0_105], %406 {strides = array<i32>} : memref<16x128xf32, #tpu.memory_space<vmem>>, vector<16x128xf32>,
    return
  }
  func.func @transform_0(%arg0: i32, %arg1: memref<2x24xi32, #tpu.memory_space<smem>>) -> (i32, i32) {
    %c0_i32 = arith.constant 0 : i32
    %c0_i32_0 = arith.constant 0 : i32
    %c0_i32_1 = arith.constant 0 : i32
    return %c0_i32, %c0_i32_0 : i32, i32
  }
  func.func @transform_1(%arg0: i32, %arg1: memref<2x24xi32, #tpu.memory_space<smem>>) -> (i32, i32) {
    %c0_i32 = arith.constant 0 : i32
    %c0_i32_0 = arith.constant 0 : i32
    %c0_i32_1 = arith.constant 0 : i32
    return %c0_i32, %c0_i32_0 : i32, i32
  }
  func.func @transform_2(%arg0: i32, %arg1: memref<2x24xi32, #tpu.memory_space<smem>>) -> (i32, i32) {
    %c0_i32 = arith.constant 0 : i32
    %c0_i32_0 = arith.constant 0 : i32
    %c0_i32_1 = arith.constant 0 : i32
    return %c0_i32, %c0_i32_0 : i32, i32
  }
}

</mosaic_0001>

<bundles_post_ra>
// kernel: gcn_forward.1
= control target key start
LH: loop header
LB: loop body
LE: loop exit
PB: predicated region body
PF: predicated region fallthrough
CT: control target
= control target key end

     0   :  { %s1494_s12 = smov [#allocation3]   ;;  %s2642_s0 = inlined_call_operand.hbm [shape: s32[2,24], index: 0, kind: input, shape index: {}]   ;;  %s2643_s1 = inlined_call_operand.hbm [shape: f32[16,32], index: 1, kind: input, shape index: {}]   ;;  %s2644_s2 = inlined_call_operand.hbm [shape: f32[200,128], index: 2, kind: input, shape index: {}]   ;;  %s2645_s3 = inlined_call_operand.vmem [shape: f32[16,128], index: 3, kind: output, shape index: {}]  }
   0x1   :  { %9 = dma.hbm_to_smem %s2642_s0, 32, %s1494_s12, [#allocation2] }
   0x2   :  { %1488 = dma.done.wait [#allocation2], 32 }
   0x3   :  { %1489 = vsyncadd [#allocation2], 4294967264 }
   0x4   :  { %11 = sfence }
   0x5   :  { %12 = vsyncpa [#allocation5], 0 }
   0x6   :  { %13 = vsyncpa [#allocation7], 0  ;;  %s1495_s15 = smov [#allocation4]  }
   0x7   :  { %s19_s16 = sshll.u32 %s1495_s15, 4  ;;  %s20_s16 = int_to_ptr.vmem [resolvable:$true] %s19_s16 }
   0x8   :  { %s1456_s17 = scalar_lea.vmem %s20_s16, 256  ;;  %p1461_p1 = scmp.lt.s32.totalorder %s20_s16, %s20_s16 }
   0x9   :  { %p1457_p0 = scmp.ne.s32.totalorder %s20_s16, %s1456_s17  ;;  %p1462_p2 = scmp.lt.s32.totalorder %s1456_s17, %s1456_s17 }
   0xb   :  { %p1463_p3 = por %p1462_p2, %p1461_p1 }
   0xd   :  { %p1464_p4 = pnand %p1463_p3, %p1457_p0 }
   0xf   :  { %1467 = shalt.err (!%p1464_p4)
}
  0x10   :  { %s1496_s18 = smov 128   ;;  %s1497_s19 = smov 8  }
  0x11   :  { %25 = dma.hbm_to_vmem [thread:$0]  %s2643_s1, 256, %s20_s16, [#allocation5], %s1496_s18, %s1496_s18, %s1497_s19  }
  0x12   :  { %s1498_s0 = smov [#allocation6]  }
  0x13   :  { %s31_s22 = sshll.u32 %s1498_s0, 4  ;;  %s32_s22 = int_to_ptr.vmem [resolvable:$true] %s31_s22 }
  0x14   :  { %s1476_s23 = scalar_lea.vmem %s32_s22, 3200  ;;  %p1481_p6 = scmp.lt.s32.totalorder %s32_s22, %s32_s22 }
  0x15   :  { %p1477_p5 = scmp.ne.s32.totalorder %s32_s22, %s1476_s23  ;;  %p1482_p7 = scmp.lt.s32.totalorder %s1476_s23, %s1476_s23 }
  0x17   :  { %p1483_p8 = por %p1482_p7, %p1481_p6 }
  0x19   :  { %p1484_p9 = pnand %p1483_p8, %p1477_p5 }
  0x1b   :  { %1487 = shalt.err (!%p1484_p9)
}
  0x1c   :  { %37 = dma.hbm_to_vmem [thread:$0]  %s2644_s2, 3200, %s32_s22, [#allocation7], %s1496_s18, %s1496_s18, %s1497_s19  }
  0x1d   :  { %1490 = dma.done.wait [#allocation5], 256  }
  0x1e   :  { %1491 = vsyncadd [#allocation5], 4294967040 }
  0x1f   :  { %1492 = dma.done.wait [#allocation7], 3200  }
  0x20   :  { %1493 = vsyncadd [#allocation7], 4294964096  ;;  %vm2646_vm0 = vcmask 261120   ;;  %v519_v0 = vld [vmem:[#allocation6 + $0x18] sm:$0xff]  ;;  %v518_v1 = vld [vmem:[#allocation6 + $0x10] sm:$0xff]  ;;  %s51_s1 = sld [smem:[#allocation3]]  ;;  %v44_v6 = vlaneseq }
  0x21   :  { %1348 = vmatprep.subr.mxu0 %v519_v0  ;;  %v514_v2 = vld [vmem:[#allocation4] sm:$0xff]  ;;  %v517_v3 = vld [vmem:[#allocation6 + $0x8] sm:$0xff]  ;;  %v516_v4 = vld [vmem:[#allocation6] sm:$0xff]  ;;  %s1233_s2 = sld [smem:[#allocation3 + $0x80]]  ;;  %v1499_v36 = vmov 0.0  }
  0x22   :  { %1349 = vmatpush3.msra.mxu0 %v519_v0  ;;  %1356 = vmatprep.mubr.msk.f32.mxu0 %vm2646_vm0, %v514_v2  ;;  %v515_v5 = vld [vmem:[#allocation4 + $0x8] sm:$0xff]  ;;  %s1234_s26 = sld [smem:[#allocation3 + $0x1]]  ;;  %v1531_v7 = vshrl.u32 %v44_v6, 7  ;;  %v1533_v8 = vand.u32 127, %v44_v6  ;;  %v611_v35 = vld [vmem:[#allocation6 + $0x30] sm:$0xff]  ;;  %v610_v39 = vld [vmem:[#allocation6 + $0x28] sm:$0xff] }
  0x23   :  { %1350 = vmatprep.subr.mxu0 %v518_v1  ;;  %s1235_s27 = sld [smem:[#allocation3 + $0x81]]  ;;  %v612_v31 = vld [vmem:[#allocation6 + $0x38] sm:$0xff]  ;;  %v609_v43 = vld [vmem:[#allocation6 + $0x20] sm:$0xff] }
  0x24   :  { %1351 = vmatpush3.msra.mxu0 %v518_v1  ;;  %s1236_s28 = sld [smem:[#allocation3 + $0x2]]  ;;  %vm49_vm2 = vcmp.eq.s32.totalorder %v1531_v7, %v1533_v8  ;;  %v1561_v13 = vadd.s32 8, %v1531_v7  ;;  %1359 = vmatprep.subr.mxu1 %v612_v31  ;;  %v1285_v44 = vld [vmem:[#allocation6 + $0xc1] ss:$0 sm:$0xff]  ;;  %v1046_v21 = vld [vmem:[#allocation6 + $0x98] sm:$0xff] }
  0x25   :  { %1352 = vmatprep.subr.mxu0 %v517_v3  ;;  %s1237_s29 = sld [smem:[#allocation3 + $0x82]]  ;;  %1360 = vmatpush3.msra.mxu1 %v612_v31  ;;  %v780_v56 = vld [vmem:[#allocation6 + $0x40] sm:$0xff] }
  0x26   :  { %1353 = vmatpush3.msra.mxu0 %v517_v3  ;;  %v1535_v9 = vstv %s51_s1  ;;  %s1537_s30 = sld [smem:[#allocation3 + $0x3]]  ;;  %1361 = vmatprep.subr.mxu1 %v611_v35  ;;  %v949_v14 = vld [vmem:[#allocation6 + $0x60] sm:$0xff] }
  0x27   :  { %1354 = vmatprep.subr.mxu0 %v516_v4  ;;  %vm54_vm1 = vcmp.eq.s32.totalorder %v1531_v7, %v1535_v9  ;;  %v1541_v10 = vstv %s1233_s2  ;;  %s1543_s4 = sld [smem:[#allocation3 + $0x83]]  ;;  %vm2675_vm5 = vcmp.eq.s32.totalorder %v1533_v8, %v1535_v9  ;;  %vm55_vm11 = vcmp.eq.s32.totalorder %v1561_v13, %v1535_v9  ;;  %1362 = vmatpush3.msra.mxu1 %v611_v35 }
  0x28   :  { %1355 = vmatpush3.msra.mxu0 %v516_v4  ;;  %vm57_vm3 = vcmp.eq.s32.totalorder %v1533_v8, %v1541_v10  ;;  %vm62_vm4 = vcmp.eq.s32.totalorder %v1531_v7, %v1541_v10  ;;  %v1556_v11 = vstv %s1234_s26  ;;  %s1571_s5 = sld [smem:[#allocation3 + $0x4]]  ;;  %1363 = vmatprep.subr.mxu1 %v610_v39 }
  0x29   :  { %1357 = vmatmul.mubr.msk.f32.vlgmr.msra.gmra.mxu0 %vm2646_vm0, %v515_v5  ;;  %vm58_vm6 = vmand %vm54_vm1, %vm57_vm3  ;;  %v1558_v12 = vstv %s1235_s27  ;;  %vm72_vm8 = vcmp.eq.s32.totalorder %v1531_v7, %v1556_v11  ;;  %s1580_s6 = sld [smem:[#allocation3 + $0x84]]  ;;  %vm2647_vm14 = vcmp.eq.s32.totalorder %v1533_v8, %v1556_v11  ;;  %1364 = vmatpush3.msra.mxu1 %v610_v39 }
  0x2a   :  { %vm1563_vm7 = vmor %vm49_vm2, %vm58_vm6  ;;  %vm2648_vm9 = vcmp.eq.s32.totalorder %v1533_v8, %v1558_v12  ;;  %v1576_v15 = vstv %s1236_s28  ;;  %vm80_vm13 = vcmp.eq.s32.totalorder %v1531_v7, %v1558_v12  ;;  %s1593_s7 = sld [smem:[#allocation3 + $0x5]]  ;;  %1365 = vmatprep.subr.mxu1 %v609_v43 }
  0x2b   :  { %vm65_vm10 = vmand %vm62_vm4, %vm2675_vm5  ;;  %v1578_v16 = vstv %s1237_s29  ;;  %vm90_vm6 = vcmp.eq.s32.totalorder %v1531_v7, %v1576_v15  ;;  %s1607_s8 = sld [smem:[#allocation3 + $0x85]]  ;;  %vm2649_vm0 = vcmp.eq.s32.totalorder %v1533_v8, %v1576_v15  ;;  %1366 = vmatpush3.msra.mxu1 %v609_v43 }
  0x2c   :  { %vm67_vm12 = vmor %vm1563_vm7, %vm65_vm10  ;;  %vm2652_vm7 = vcmp.eq.s32.totalorder %v1533_v8, %v1578_v16  ;;  %v1617_v19 = vstv %s1537_s30  ;;  %s1622_s9 = sld [smem:[#allocation3 + $0x6]] }
  0x2d   :  { %vm76_vm15 = vmand %vm72_vm8, %vm2648_vm9  ;;  %v1620_v20 = vstv %s1543_s4  ;;  %s1636_s10 = sld [smem:[#allocation3 + $0x86]]  ;;  %vm108_vm10 = vcmp.eq.s32.totalorder %v1531_v7, %v1617_v19 }
  0x2e   :  { %vm1599_vm4 = vmor %vm67_vm12, %vm76_vm15  ;;  %vm98_vm15 = vcmp.eq.s32.totalorder %v1531_v7, %v1578_v16  ;;  %s1641_s11 = sld [smem:[#allocation3 + $0x7]]  ;;  %vm2651_vm9 = vcmp.eq.s32.totalorder %v1533_v8, %v1620_v20  ;;  %v1665_v23 = vstv %s1571_s5 }
  0x2f   :  { %vm1612_vm8 = vmand %vm80_vm13, %vm2647_vm14  ;;  %s1655_s12 = sld [smem:[#allocation3 + $0x87]]  ;;  %v1668_v24 = vstv %s1580_s6  ;;  %vm126_vm12 = vcmp.eq.s32.totalorder %v1531_v7, %v1665_v23 }
  0x30   :  { %vm85_vm13 = vmor %vm1599_vm4, %vm1612_vm8  ;;  %s1670_s13 = sld [smem:[#allocation3 + $0x8]]  ;;  %vm116_vm4 = vcmp.eq.s32.totalorder %v1531_v7, %v1620_v20  ;;  %v1704_v26 = vstv %s1593_s7 }
  0x31   :  { %vm94_vm14 = vmand %vm90_vm6, %vm2652_vm7  ;;  %s1684_s14 = sld [smem:[#allocation3 + $0x88]]  ;;  %v1707_v27 = vstv %s1607_s8 }
  0x32   :  { %vm1647_vm8 = vmor %vm85_vm13, %vm94_vm14  ;;  %s1689_s15 = sld [smem:[#allocation3 + $0x9]]  ;;  %v1733_v29 = vstv %s1622_s9  ;;  %vm2655_vm7 = vcmp.eq.s32.totalorder %v1533_v8, %v1707_v27 }
  0x33   :  { %vm1660_vm6 = vmand %vm98_vm15, %vm2649_vm0  ;;  %vm2650_vm0 = vcmp.eq.s32.totalorder %v1533_v8, %v1617_v19  ;;  %s1709_s16 = sld [smem:[#allocation3 + $0x89]]  ;;  %v1736_v30 = vstv %s1636_s10 }
  0x34   :  { %vm103_vm15 = vmor %vm1647_vm8, %vm1660_vm6  ;;  %s1718_s17 = sld [smem:[#allocation3 + $0xa]]  ;;  %v1759_v33 = vstv %s1641_s11 }
  0x35   :  { %vm112_vm14 = vmand %vm108_vm10, %vm2651_vm9  ;;  %vm2656_vm10 = vcmp.eq.s32.totalorder %v1533_v8, %v1668_v24  ;;  %s1738_s18 = sld [smem:[#allocation3 + $0x8a]]  ;;  %vm144_vm9 = vcmp.eq.s32.totalorder %v1531_v7, %v1704_v26  ;;  %v1762_v34 = vstv %s1655_s12 }
  0x36   :  { %vm1695_vm6 = vmor %vm103_vm15, %vm112_vm14  ;;  %s1774_s19 = sld [smem:[#allocation3 + $0xb]]  ;;  %v1789_v37 = vstv %s1670_s13 }
  0x37   :  { %vm1714_vm8 = vmand %vm116_vm4, %vm2650_vm0  ;;  %vm134_vm4 = vcmp.eq.s32.totalorder %v1531_v7, %v1668_v24  ;;  %vm2653_vm0 = vcmp.eq.s32.totalorder %v1533_v8, %v1665_v23  ;;  %v1792_v38 = vstv %s1684_s14  ;;  %s1794_s20 = sld [smem:[#allocation3 + $0x8b]] }
  0x38   :  { %vm121_vm13 = vmor %vm1695_vm6, %vm1714_vm8  ;;  %vm2654_vm6 = vcmp.eq.s32.totalorder %v1533_v8, %v1704_v26  ;;  %s1802_s21 = sld [smem:[#allocation3 + $0xc]]  ;;  %v1817_v41 = vstv %s1689_s15 }
  0x39   :  { %vm130_vm8 = vmand %vm126_vm12, %vm2656_vm10  ;;  %v1820_v42 = vstv %s1709_s16  ;;  %s1822_s0 = sld [smem:[#allocation3 + $0x8c]]  ;;  %vm2659_vm10 = vcmp.eq.s32.totalorder %v1533_v8, %v1762_v34 }
  0x3a   :  { %vm1750_vm14 = vmor %vm121_vm13, %vm130_vm8  ;;  %s1834_s22 = sld [smem:[#allocation3 + $0xd]]  ;;  %v1849_v45 = vstv %s1718_s17  ;;  %vm2658_vm8 = vcmp.eq.s32.totalorder %v1533_v8, %v1759_v33 }
  0x3b   :  { %vm1770_vm12 = vmand %vm134_vm4, %vm2653_vm0  ;;  %vm152_vm4 = vcmp.eq.s32.totalorder %v1531_v7, %v1707_v27  ;;  %vm162_vm0 = vcmp.eq.s32.totalorder %v1531_v7, %v1733_v29  ;;  %v1852_v46 = vstv %s1738_s18  ;;  %s1854_s23 = sld [smem:[#allocation3 + $0x8d]] }
  0x3c   :  { %vm139_vm15 = vmor %vm1750_vm14, %vm1770_vm12  ;;  %s1862_s24 = sld [smem:[#allocation3 + $0xe]]  ;;  %v1890_v48 = vstv %s1774_s19 }
  0x3d   :  { %vm148_vm14 = vmand %vm144_vm9, %vm2655_vm7  ;;  %vm2661_vm9 = vcmp.eq.s32.totalorder %v1533_v8, %v1736_v30  ;;  %vm180_vm7 = vcmp.eq.s32.totalorder %v1531_v7, %v1759_v33  ;;  %s1876_s25 = sld [smem:[#allocation3 + $0x8e]]  ;;  %v1893_v49 = vstv %s1794_s20 }
  0x3e   :  { %vm1808_vm13 = vmor %vm139_vm15, %vm148_vm14  ;;  %s1881_s1 = sld [smem:[#allocation3 + $0xf]]  ;;  %v1915_v51 = vstv %s1802_s21 }
  0x3f   :  { %vm1830_vm15 = vmand %vm152_vm4, %vm2654_vm6  ;;  %vm170_vm4 = vcmp.eq.s32.totalorder %v1531_v7, %v1736_v30  ;;  %vm2657_vm6 = vcmp.eq.s32.totalorder %v1533_v8, %v1733_v29  ;;  %s1895_s2 = sld [smem:[#allocation3 + $0x8f]]  ;;  %v1918_v52 = vstv %s1822_s0 }
  0x40   :  { %vm157_vm12 = vmor %vm1808_vm13, %vm1830_vm15  ;;  %s1900_s26 = sld [smem:[#allocation3 + $0x10]]  ;;  %v1947_v54 = vstv %s1834_s22 }
  0x41   :  { %vm166_vm13 = vmand %vm162_vm0, %vm2661_vm9  ;;  %s1920_s27 = sld [smem:[#allocation3 + $0x90]]  ;;  %v1950_v55 = vstv %s1854_s23  ;;  %vm2664_vm9 = vcmp.eq.s32.totalorder %v1533_v8, %v1817_v41 }
  0x42   :  { %vm1868_vm14 = vmor %vm157_vm12, %vm166_vm13  ;;  %vm188_vm13 = vcmp.eq.s32.totalorder %v1531_v7, %v1762_v34  ;;  %s1932_s28 = sld [smem:[#allocation3 + $0x11]]  ;;  %v1975_v57 = vstv %s1862_s24 }
  0x43   :  { %vm173_vm0 = vmand %vm170_vm4, %vm2657_vm6  ;;  %vm198_vm6 = vcmp.eq.s32.totalorder %v1531_v7, %v1789_v37  ;;  %s1952_s29 = sld [smem:[#allocation3 + $0x91]]  ;;  %v1978_v58 = vstv %s1876_s25 }
  0x44   :  { %vm175_vm12 = vmor %vm1868_vm14, %vm173_vm0  ;;  %s1960_s30 = sld [smem:[#allocation3 + $0x12]]  ;;  %v2001_v59 = vstv %s1881_s1 }
  0x45   :  { %vm184_vm4 = vmand %vm180_vm7, %vm2659_vm10  ;;  %vm2660_vm7 = vcmp.eq.s32.totalorder %v1533_v8, %v1792_v38  ;;  %vm216_vm10 = vcmp.eq.s32.totalorder %v1531_v7, %v1817_v41  ;;  %s1980_s4 = sld [smem:[#allocation3 + $0x92]]  ;;  %v2004_v60 = vstv %s1895_s2  ;;  %vm324_vm2 = vcmp.eq.s32.totalorder %v1531_v7, %v2001_v59 }
  0x46   :  { %vm1906_vm15 = vmor %vm175_vm12, %vm184_vm4  ;;  %s1988_s5 = sld [smem:[#allocation3 + $0x13]]  ;;  %v2027_v62 = vstv %s1900_s26 }
  0x47   :  { %vm1928_vm12 = vmand %vm188_vm13, %vm2658_vm8  ;;  %vm206_vm13 = vcmp.eq.s32.totalorder %v1531_v7, %v1792_v38  ;;  %vm2662_vm8 = vcmp.eq.s32.totalorder %v1533_v8, %v1789_v37  ;;  %s2006_s6 = sld [smem:[#allocation3 + $0x93]]  ;;  %v2030_v63 = vstv %s1920_s27 }
  0x48   :  { %vm193_vm14 = vmor %vm1906_vm15, %vm1928_vm12  ;;  %s2032_s7 = sld [smem:[#allocation3 + $0x14]]  ;;  %v2048_v0 = vstv %s1932_s28  ;;  %vm350_vm5 = vcmp.eq.s32.totalorder %v1531_v7, %v2030_v63 }
  0x49   :  { %vm202_vm0 = vmand %vm198_vm6, %vm2660_vm7  ;;  %vm2663_vm6 = vcmp.eq.s32.totalorder %v1533_v8, %v1820_v42  ;;  %vm224_vm7 = vcmp.eq.s32.totalorder %v1531_v7, %v1820_v42  ;;  %v2051_v1 = vstv %s1952_s29  ;;  %s2053_s8 = sld [smem:[#allocation3 + $0x94]] }
  0x4a   :  { %vm1966_vm4 = vmor %vm193_vm14, %vm202_vm0  ;;  %vm234_vm0 = vcmp.eq.s32.totalorder %v1531_v7, %v1849_v45  ;;  %v2071_v3 = vstv %s1960_s30  ;;  %s1274_s9 = sld [smem:[#allocation3 + $0x15]] }
  0x4b   :  { %vm209_vm14 = vmand %vm206_vm13, %vm2662_vm8  ;;  %vm2665_vm8 = vcmp.eq.s32.totalorder %v1533_v8, %v1852_v46  ;;  %vm242_vm13 = vcmp.eq.s32.totalorder %v1531_v7, %v1852_v46  ;;  %v2074_v4 = vstv %s1980_s4  ;;  %s1275_s10 = sld [smem:[#allocation3 + $0x95]] }
  0x4c   :  { %vm211_vm15 = vmor %vm1966_vm4, %vm209_vm14  ;;  %v2090_v5 = vstv %s1988_s5  ;;  %s1276_s11 = sld [smem:[#allocation3 + $0x16]] }
  0x4d   :  { %vm220_vm4 = vmand %vm216_vm10, %vm2663_vm6  ;;  %vm2666_vm6 = vcmp.eq.s32.totalorder %v1533_v8, %v1849_v45  ;;  %v2093_v6 = vstv %s2006_s6  ;;  %s1277_s12 = sld [smem:[#allocation3 + $0x96]] }
  0x4e   :  { %vm2018_vm12 = vmor %vm211_vm15, %vm220_vm4  ;;  %vm252_vm15 = vcmp.eq.s32.totalorder %v1531_v7, %v1890_v48  ;;  %v2111_v17 = vstv %s2032_s7  ;;  %s1278_s13 = sld [smem:[#allocation3 + $0x17]] }
  0x4f   :  { %vm227_vm10 = vmand %vm224_vm7, %vm2664_vm9  ;;  %vm2667_vm9 = vcmp.eq.s32.totalorder %v1533_v8, %v1893_v49  ;;  %v2125_v18 = vstv %s2053_s8  ;;  %s1279_s14 = sld [smem:[#allocation3 + $0x97]] }
  0x50   :  { %vm229_vm14 = vmor %vm2018_vm12, %vm227_vm10  ;;  %vm260_vm12 = vcmp.eq.s32.totalorder %v1531_v7, %v1893_v49  ;;  %v2140_v22 = vstv %s1274_s9 }
  0x51   :  { %vm238_vm7 = vmand %vm234_vm0, %vm2665_vm8  ;;  %vm2669_vm8 = vcmp.eq.s32.totalorder %v1533_v8, %v1890_v48  ;;  %v2153_v25 = vstv %s1275_s10 }
  0x52   :  { %vm2062_vm4 = vmor %vm229_vm14, %vm238_vm7  ;;  %vm270_vm14 = vcmp.eq.s32.totalorder %v1531_v7, %v1915_v51  ;;  %vm2670_vm7 = vcmp.eq.s32.totalorder %v1533_v8, %v1915_v51  ;;  %v2164_v28 = vstv %s1276_s11 }
  0x53   :  { %vm245_vm0 = vmand %vm242_vm13, %vm2666_vm6  ;;  %vm2668_vm6 = vcmp.eq.s32.totalorder %v1533_v8, %v1918_v52  ;;  %v2175_v31 = vstv %s1277_s12 }
  0x54   :  { %vm247_vm10 = vmor %vm2062_vm4, %vm245_vm0  ;;  %v2186_v32 = vstv %s1278_s13 }
  0x55   :  { %vm256_vm13 = vmand %vm252_vm15, %vm2667_vm9  ;;  %v2197_v35 = vstv %s1279_s14 }
  0x56   :  { %vm2102_vm0 = vmor %vm247_vm10, %vm256_vm13  ;;  %vm278_vm13 = vcmp.eq.s32.totalorder %v1531_v7, %v1918_v52 }
  0x57   :  { %vm263_vm15 = vmand %vm260_vm12, %vm2669_vm8 }
  0x58   :  { %vm265_vm10 = vmor %vm2102_vm0, %vm263_vm15  ;;  %vm288_vm0 = vcmp.eq.s32.totalorder %v1531_v7, %v1947_v54  ;;  %vm2671_vm15 = vcmp.eq.s32.totalorder %v1533_v8, %v1950_v55 }
  0x59   :  { %vm274_vm9 = vmand %vm270_vm14, %vm2668_vm6  ;;  %vm2672_vm6 = vcmp.eq.s32.totalorder %v1533_v8, %v1947_v54 }
  0x5a   :  { %vm2132_vm4 = vmor %vm265_vm10, %vm274_vm9  ;;  %vm296_vm10 = vcmp.eq.s32.totalorder %v1531_v7, %v1950_v55 }
  0x5b   :  { %vm281_vm14 = vmand %vm278_vm13, %vm2670_vm7  ;;  %vm314_vm13 = vcmp.eq.s32.totalorder %v1531_v7, %v1978_v58 }
  0x5c   :  { %vm283_vm9 = vmor %vm2132_vm4, %vm281_vm14  ;;  %vm306_vm4 = vcmp.eq.s32.totalorder %v1531_v7, %v1975_v57  ;;  %vm2673_vm14 = vcmp.eq.s32.totalorder %v1533_v8, %v1978_v58 }
  0x5d   :  { %vm292_vm8 = vmand %vm288_vm0, %vm2671_vm15  ;;  %vm332_vm15 = vcmp.eq.s32.totalorder %v1531_v7, %v2004_v60 }
  0x5e   :  { %vm294_vm12 = vmor %vm283_vm9, %vm292_vm8  ;;  %vm2674_vm8 = vcmp.eq.s32.totalorder %v1533_v8, %v1975_v57 }
  0x5f   :  { %vm299_vm7 = vmand %vm296_vm10, %vm2672_vm6  ;;  %vm342_vm6 = vcmp.eq.s32.totalorder %v1531_v7, %v2027_v62 }
  0x60   :  { %vm301_vm0 = vmor %vm294_vm12, %vm299_vm7  ;;  %vm2676_vm7 = vcmp.eq.s32.totalorder %v1533_v8, %v2004_v60 }
  0x61   :  { %vm310_vm9 = vmand %vm306_vm4, %vm2673_vm14  ;;  %vm360_vm14 = vcmp.eq.s32.totalorder %v1531_v7, %v2048_v0 }
  0x62   :  { %vm312_vm10 = vmor %vm301_vm0, %vm310_vm9  ;;  %vm2677_vm0 = vcmp.eq.s32.totalorder %v1533_v8, %v2001_v59 }
  0x63   :  { %vm317_vm12 = vmand %vm314_vm13, %vm2674_vm8 }
  0x64   :  { %vm319_vm4 = vmor %vm312_vm10, %vm317_vm12  ;;  %vm2678_vm10 = vcmp.eq.s32.totalorder %v1533_v8, %v2030_v63 }
  0x65   :  { %vm328_vm9 = vmand %vm324_vm2, %vm2676_vm7  ;;  %vm2679_vm2 = vcmp.eq.s32.totalorder %v1533_v8, %v2027_v62  ;;  %vm2680_vm7 = vcmp.eq.s32.totalorder %v1533_v8, %v2051_v1 }
  0x66   :  { %vm330_vm13 = vmor %vm319_vm4, %vm328_vm9 }
  0x67   :  { %vm335_vm12 = vmand %vm332_vm15, %vm2677_vm0  ;;  %vm2681_vm0 = vcmp.eq.s32.totalorder %v1533_v8, %v2048_v0 }
  0x68   :  { %vm337_vm8 = vmor %vm330_vm13, %vm335_vm12  ;;  %vm368_vm12 = vcmp.eq.s32.totalorder %v1531_v7, %v2051_v1 }
  0x69   :  { %vm346_vm4 = vmand %vm342_vm6, %vm2678_vm10  ;;  %vm2682_vm10 = vcmp.eq.s32.totalorder %v1533_v8, %v2074_v4 }
  0x6a   :  { %vm348_vm9 = vmor %vm337_vm8, %vm346_vm4  ;;  %vm378_vm4 = vcmp.eq.s32.totalorder %v1531_v7, %v2071_v3 }
  0x6b   :  { %vm353_vm15 = vmand %vm350_vm5, %vm2679_vm2  ;;  %vm2683_vm2 = vcmp.eq.s32.totalorder %v1533_v8, %v2071_v3 }
  0x6c   :  { %vm355_vm13 = vmor %vm348_vm9, %vm353_vm15  ;;  %vm386_vm15 = vcmp.eq.s32.totalorder %v1531_v7, %v2074_v4 }
  0x6d   :  { %vm364_vm6 = vmand %vm360_vm14, %vm2680_vm7  ;;  %vm2684_vm7 = vcmp.eq.s32.totalorder %v1533_v8, %v2093_v6 }
  0x6e   :  { %vm366_vm8 = vmor %vm355_vm13, %vm364_vm6  ;;  %vm396_vm6 = vcmp.eq.s32.totalorder %v1531_v7, %v2090_v5 }
  0x6f   :  { %vm371_vm5 = vmand %vm368_vm12, %vm2681_vm0  ;;  %vm2685_vm0 = vcmp.eq.s32.totalorder %v1533_v8, %v2090_v5 }
  0x70   :  { %vm373_vm9 = vmor %vm366_vm8, %vm371_vm5  ;;  %vm404_vm5 = vcmp.eq.s32.totalorder %v1531_v7, %v2093_v6 }
  0x71   :  { %vm382_vm14 = vmand %vm378_vm4, %vm2682_vm10  ;;  %vm2686_vm10 = vcmp.eq.s32.totalorder %v1533_v8, %v2125_v18 }
  0x72   :  { %vm384_vm13 = vmor %vm373_vm9, %vm382_vm14  ;;  %vm414_vm14 = vcmp.eq.s32.totalorder %v1531_v7, %v2111_v17 }
  0x73   :  { %vm389_vm12 = vmand %vm386_vm15, %vm2683_vm2  ;;  %vm2687_vm2 = vcmp.eq.s32.totalorder %v1533_v8, %v2111_v17 }
  0x74   :  { %vm391_vm8 = vmor %vm384_vm13, %vm389_vm12  ;;  %vm422_vm12 = vcmp.eq.s32.totalorder %v1531_v7, %v2125_v18 }
  0x75   :  { %vm400_vm4 = vmand %vm396_vm6, %vm2684_vm7  ;;  %vm2688_vm7 = vcmp.eq.s32.totalorder %v1533_v8, %v2153_v25 }
  0x76   :  { %vm402_vm9 = vmor %vm391_vm8, %vm400_vm4  ;;  %vm432_vm4 = vcmp.eq.s32.totalorder %v1531_v7, %v2140_v22 }
  0x77   :  { %vm407_vm15 = vmand %vm404_vm5, %vm2685_vm0  ;;  %vm2689_vm0 = vcmp.eq.s32.totalorder %v1533_v8, %v2140_v22 }
  0x78   :  { %vm409_vm13 = vmor %vm402_vm9, %vm407_vm15  ;;  %vm440_vm15 = vcmp.eq.s32.totalorder %v1531_v7, %v2153_v25 }
  0x79   :  { %vm418_vm6 = vmand %vm414_vm14, %vm2686_vm10  ;;  %vm2690_vm10 = vcmp.eq.s32.totalorder %v1533_v8, %v2175_v31 }
  0x7a   :  { %vm420_vm8 = vmor %vm409_vm13, %vm418_vm6  ;;  %vm450_vm6 = vcmp.eq.s32.totalorder %v1531_v7, %v2164_v28 }
  0x7b   :  { %vm425_vm5 = vmand %vm422_vm12, %vm2687_vm2  ;;  %vm460_vm2 = vcmp.eq.s32.totalorder %v1533_v8, %v2164_v28 }
  0x7c   :  { %vm427_vm9 = vmor %vm420_vm8, %vm425_vm5  ;;  %vm458_vm5 = vcmp.eq.s32.totalorder %v1531_v7, %v2175_v31 }
  0x7d   :  { %vm436_vm14 = vmand %vm432_vm4, %vm2688_vm7  ;;  %vm471_vm7 = vcmp.eq.s32.totalorder %v1533_v8, %v2197_v35 }
  0x7e   :  { %vm438_vm13 = vmor %vm427_vm9, %vm436_vm14  ;;  %vm468_vm14 = vcmp.eq.s32.totalorder %v1531_v7, %v2186_v32 }
  0x7f   :  { %vm443_vm12 = vmand %vm440_vm15, %vm2689_vm0  ;;  %vm2692_vm0 = vcmp.eq.s32.totalorder %v1533_v8, %v2186_v32 }
  0x80   :  { %vm445_vm8 = vmor %vm438_vm13, %vm443_vm12  ;;  %vm476_vm12 = vcmp.eq.s32.totalorder %v1531_v7, %v2197_v35 }
  0x81   :  { %vm454_vm4 = vmand %vm450_vm6, %vm2690_vm10  ;;  %vm2691_vm10 = vcmask 130048  }
  0x82   :  { %vm456_vm9 = vmor %vm445_vm8, %vm454_vm4 }
  0x83   :  { %vm461_vm15 = vmand %vm458_vm5, %vm460_vm2 }
  0x84   :  { %vm463_vm13 = vmor %vm456_vm9, %vm461_vm15  ;;  %vm2731_vm9 = vcmp.eq.s32.totalorder %v1561_v13, %v1533_v8  ;;  %vm2733_vm15 = vcmp.eq.s32.totalorder %v1561_v13, %v1541_v10 }
  0x85   :  { %vm472_vm6 = vmand %vm468_vm14, %vm471_vm7 }
  0x86   :  { %vm474_vm8 = vmor %vm463_vm13, %vm472_vm6 }
  0x87   :  { %vm479_vm4 = vmand %vm476_vm12, %vm2692_vm0 }
  0x88   :  { %vm481_vm1 = vmor %vm474_vm8, %vm479_vm4  ;;  %vm2736_vm4 = vcmp.eq.s32.totalorder %v1533_v8, %v1556_v11 }
  0x89   :  { %v2320_v39 = vsel %vm481_vm1, 1.0, %v1499_v36  ;;  %vm59_vm5 = vmand %vm55_vm11, %vm57_vm3  ;;  %vm2732_vm1 = vcmp.eq.s32.totalorder %v1533_v8, %v1535_v9  ;;  %vm2734_vm3 = vcmp.eq.s32.totalorder %v1533_v8, %v1558_v12  ;;  %vm2735_vm11 = vcmp.eq.s32.totalorder %v1561_v13, %v1556_v11  ;;  %v1282_v9 = vld [vmem:[#allocation6 + $0xc0] ss:$0 sm:$0xff] }
  0x8a   :  { %v2330_v7 = vsel %vm2691_vm10, %v2320_v39, 0.0  ;;  %vm61_vm14 = vmor %vm2731_vm9, %vm59_vm5  ;;  %vm2737_vm5 = vcmp.eq.s32.totalorder %v1561_v13, %v1558_v12 }
  0x8b   :  { %489 = vadd.xlane.f32.xlu0 %v2330_v7  ;;  %vm66_vm13 = vmand %vm2733_vm15, %vm2732_vm1  ;;  %vm2738_vm1 = vcmp.eq.s32.totalorder %v1533_v8, %v1578_v16 }
  0x8c   :  { %vm68_vm12 = vmor %vm61_vm14, %vm66_vm13  ;;  %vm2739_vm14 = vcmp.eq.s32.totalorder %v1561_v13, %v1576_v15 }
  0x8d   :  { %vm77_vm6 = vmand %vm2735_vm11, %vm2734_vm3  ;;  %vm2740_vm3 = vcmp.eq.s32.totalorder %v1533_v8, %v1576_v15 }
  0x8e   :  { %vm79_vm8 = vmor %vm68_vm12, %vm77_vm6  ;;  %vm2741_vm12 = vcmp.eq.s32.totalorder %v1561_v13, %v1578_v16 }
  0x8f   :  { %vm84_vm9 = vmand %vm2737_vm5, %vm2736_vm4  ;;  %vm2742_vm4 = vcmp.eq.s32.totalorder %v1533_v8, %v1620_v20 }
  0x90   :  { %vm86_vm10 = vmor %vm79_vm8, %vm84_vm9  ;;  %vm2743_vm8 = vcmp.eq.s32.totalorder %v1561_v13, %v1617_v19 }
  0x91   :  { %vm95_vm15 = vmand %vm2739_vm14, %vm2738_vm1  ;;  %vm2744_vm1 = vcmp.eq.s32.totalorder %v1533_v8, %v1617_v19 }
  0x92   :  { %vm97_vm13 = vmor %vm86_vm10, %vm95_vm15  ;;  %vm2745_vm10 = vcmp.eq.s32.totalorder %v1561_v13, %v1620_v20 }
  0x93   :  { %vm102_vm11 = vmand %vm2741_vm12, %vm2740_vm3  ;;  %vm2746_vm3 = vcmp.eq.s32.totalorder %v1533_v8, %v1668_v24 }
  0x94   :  { %vm104_vm6 = vmor %vm97_vm13, %vm102_vm11  ;;  %vm2747_vm13 = vcmp.eq.s32.totalorder %v1561_v13, %v1665_v23 }
  0x95   :  { %vm113_vm5 = vmand %vm2743_vm8, %vm2742_vm4  ;;  %vm2748_vm4 = vcmp.eq.s32.totalorder %v1533_v8, %v1665_v23 }
  0x96   :  { %vm115_vm9 = vmor %vm104_vm6, %vm113_vm5  ;;  %vm2749_vm6 = vcmp.eq.s32.totalorder %v1561_v13, %v1668_v24 }
  0x97   :  { %vm120_vm14 = vmand %vm2745_vm10, %vm2744_vm1  ;;  %vm2750_vm1 = vcmp.eq.s32.totalorder %v1533_v8, %v1707_v27 }
  0x98   :  { %vm122_vm15 = vmor %vm115_vm9, %vm120_vm14  ;;  %vm2751_vm9 = vcmp.eq.s32.totalorder %v1561_v13, %v1704_v26 }
  0x99   :  { %vm131_vm12 = vmand %vm2747_vm13, %vm2746_vm3  ;;  %vm2752_vm3 = vcmp.eq.s32.totalorder %v1533_v8, %v1704_v26 }
  0x9a   :  { %vm133_vm11 = vmor %vm122_vm15, %vm131_vm12  ;;  %vm2753_vm15 = vcmp.eq.s32.totalorder %v1561_v13, %v1707_v27 }
  0x9b   :  { %vm138_vm8 = vmand %vm2749_vm6, %vm2748_vm4  ;;  %vm2754_vm4 = vcmp.eq.s32.totalorder %v1533_v8, %v1736_v30 }
  0x9c   :  { %vm140_vm5 = vmor %vm133_vm11, %vm138_vm8  ;;  %vm2755_vm11 = vcmp.eq.s32.totalorder %v1561_v13, %v1733_v29 }
  0x9d   :  { %vm149_vm10 = vmand %vm2751_vm9, %vm2750_vm1  ;;  %vm2756_vm1 = vcmp.eq.s32.totalorder %v1533_v8, %v1733_v29 }
  0x9e   :  { %vm151_vm14 = vmor %vm140_vm5, %vm149_vm10  ;;  %vm2757_vm5 = vcmp.eq.s32.totalorder %v1561_v13, %v1736_v30 }
  0x9f   :  { %vm156_vm13 = vmand %vm2753_vm15, %vm2752_vm3  ;;  %vm2758_vm3 = vcmp.eq.s32.totalorder %v1533_v8, %v1762_v34 }
  0xa0   :  { %vm158_vm12 = vmor %vm151_vm14, %vm156_vm13  ;;  %vm2759_vm14 = vcmp.eq.s32.totalorder %v1561_v13, %v1759_v33 }
  0xa1   :  { %vm167_vm6 = vmand %vm2755_vm11, %vm2754_vm4  ;;  %vm2760_vm4 = vcmp.eq.s32.totalorder %v1533_v8, %v1759_v33 }
  0xa2   :  { %vm169_vm8 = vmor %vm158_vm12, %vm167_vm6  ;;  %vm2761_vm12 = vcmp.eq.s32.totalorder %v1561_v13, %v1762_v34 }
  0xa3   :  { %vm174_vm9 = vmand %vm2757_vm5, %vm2756_vm1  ;;  %vm2762_vm1 = vcmp.eq.s32.totalorder %v1533_v8, %v1792_v38 }
  0xa4   :  { %vm176_vm10 = vmor %vm169_vm8, %vm174_vm9  ;;  %vm2763_vm8 = vcmp.eq.s32.totalorder %v1561_v13, %v1789_v37 }
  0xa5   :  { %vm185_vm15 = vmand %vm2759_vm14, %vm2758_vm3  ;;  %vm2764_vm3 = vcmp.eq.s32.totalorder %v1533_v8, %v1789_v37 }
  0xa6   :  { %vm187_vm13 = vmor %vm176_vm10, %vm185_vm15  ;;  %vm2765_vm10 = vcmp.eq.s32.totalorder %v1561_v13, %v1792_v38 }
  0xa7   :  { %vm192_vm11 = vmand %vm2761_vm12, %vm2760_vm4  ;;  %vm2766_vm4 = vcmp.eq.s32.totalorder %v1533_v8, %v1820_v42 }
  0xa8   :  { %vm194_vm6 = vmor %vm187_vm13, %vm192_vm11  ;;  %vm2767_vm13 = vcmp.eq.s32.totalorder %v1561_v13, %v1817_v41 }
  0xa9   :  { %vm203_vm5 = vmand %vm2763_vm8, %vm2762_vm1  ;;  %vm2768_vm1 = vcmp.eq.s32.totalorder %v1533_v8, %v1817_v41 }
  0xaa   :  { %vm205_vm9 = vmor %vm194_vm6, %vm203_vm5  ;;  %vm2769_vm6 = vcmp.eq.s32.totalorder %v1561_v13, %v1820_v42 }
  0xab   :  { %vm210_vm14 = vmand %vm2765_vm10, %vm2764_vm3  ;;  %vm2770_vm3 = vcmp.eq.s32.totalorder %v1533_v8, %v1852_v46 }
  0xac   :  { %vm212_vm15 = vmor %vm205_vm9, %vm210_vm14  ;;  %vm2771_vm9 = vcmp.eq.s32.totalorder %v1561_v13, %v1849_v45 }
  0xad   :  { %vm221_vm12 = vmand %vm2767_vm13, %vm2766_vm4  ;;  %vm2772_vm4 = vcmp.eq.s32.totalorder %v1533_v8, %v1849_v45 }
  0xae   :  { %vm223_vm11 = vmor %vm212_vm15, %vm221_vm12  ;;  %vm2773_vm15 = vcmp.eq.s32.totalorder %v1561_v13, %v1852_v46 }
  0xaf   :  { %vm228_vm8 = vmand %vm2769_vm6, %vm2768_vm1  ;;  %vm2774_vm1 = vcmp.eq.s32.totalorder %v1533_v8, %v1893_v49 }
  0xb0   :  { %vm230_vm5 = vmor %vm223_vm11, %vm228_vm8  ;;  %vm2775_vm11 = vcmp.eq.s32.totalorder %v1561_v13, %v1890_v48 }
  0xb1   :  { %vm239_vm10 = vmand %vm2771_vm9, %vm2770_vm3  ;;  %vm2776_vm3 = vcmp.eq.s32.totalorder %v1533_v8, %v1890_v48 }
  0xb2   :  { %vm241_vm14 = vmor %vm230_vm5, %vm239_vm10  ;;  %vm2777_vm5 = vcmp.eq.s32.totalorder %v1561_v13, %v1893_v49 }
  0xb3   :  { %vm246_vm13 = vmand %vm2773_vm15, %vm2772_vm4  ;;  %vm2779_vm4 = vcmp.eq.s32.totalorder %v1561_v13, %v1915_v51 }
  0xb4   :  { %vm248_vm12 = vmor %vm241_vm14, %vm246_vm13  ;;  %vm2778_vm14 = vcmp.eq.s32.totalorder %v1533_v8, %v1918_v52 }
  0xb5   :  { %vm257_vm6 = vmand %vm2775_vm11, %vm2774_vm1  ;;  %vm2781_vm1 = vcmp.eq.s32.totalorder %v1561_v13, %v1918_v52  ;;  %v783_v52 = vld [vmem:[#allocation6 + $0x58] sm:$0xff] }
  0xb6   :  { %vm259_vm8 = vmor %vm248_vm12, %vm257_vm6  ;;  %vm2780_vm12 = vcmp.eq.s32.totalorder %v1533_v8, %v1915_v51 }
  0xb7   :  { %vm264_vm9 = vmand %vm2777_vm5, %vm2776_vm3  ;;  %vm2783_vm3 = vcmp.eq.s32.totalorder %v1561_v13, %v1947_v54 }
  0xb8   :  { %vm266_vm10 = vmor %vm259_vm8, %vm264_vm9  ;;  %vm2782_vm8 = vcmp.eq.s32.totalorder %v1533_v8, %v1950_v55 }
  0xb9   :  { %vm275_vm15 = vmand %vm2779_vm4, %vm2778_vm14  ;;  %vm2785_vm14 = vcmp.eq.s32.totalorder %v1561_v13, %v1950_v55  ;;  %v781_v55 = vld [vmem:[#allocation6 + $0x48] sm:$0xff] }
  0xba   :  { %vm277_vm13 = vmor %vm266_vm10, %vm275_vm15  ;;  %vm2784_vm10 = vcmp.eq.s32.totalorder %v1533_v8, %v1947_v54  ;;  %v782_v54 = vld [vmem:[#allocation6 + $0x50] sm:$0xff] }
  0xbb   :  { %vm282_vm11 = vmand %vm2781_vm1, %vm2780_vm12  ;;  %vm2787_vm12 = vcmp.eq.s32.totalorder %v1533_v8, %v1978_v58  ;;  %vm2788_vm1 = vcmp.eq.s32.totalorder %v1561_v13, %v1975_v57 }
  0xbc   :  { %vm284_vm6 = vmor %vm277_vm13, %vm282_vm11  ;;  %vm2786_vm13 = vcmask 261120  }
  0xbd   :  { %vm293_vm5 = vmand %vm2783_vm3, %vm2782_vm8  ;;  %vm2790_vm3 = vcmp.eq.s32.totalorder %v1533_v8, %v1975_v57 }
  0xbe   :  { %vm295_vm9 = vmor %vm284_vm6, %vm293_vm5  ;;  %vm2791_vm5 = vcmp.eq.s32.totalorder %v1561_v13, %v1978_v58 }
  0xbf   :  { %vm300_vm4 = vmand %vm2785_vm14, %vm2784_vm10  ;;  %vm2792_vm14 = vcmp.eq.s32.totalorder %v1533_v8, %v2004_v60 }
  0xc0   :  { %vm302_vm15 = vmor %vm295_vm9, %vm300_vm4  ;;  %vm2793_vm4 = vcmp.eq.s32.totalorder %v1561_v13, %v2001_v59 }
  0xc1   :  { %vm311_vm11 = vmand %vm2788_vm1, %vm2787_vm12  ;;  %vm2794_vm12 = vcmp.eq.s32.totalorder %v1533_v8, %v2001_v59  ;;  %v1290_v59 = vld [vmem:[#allocation6 + $0xc2] ss:$0 sm:$0xff] }
  0xc2   :  { %vm2789_vm6 = vmmov %vm2786_vm13 }
  0xc3   :  { %vm313_vm8 = vmor %vm302_vm15, %vm311_vm11  ;;  %vm2795_vm15 = vcmp.eq.s32.totalorder %v1561_v13, %v2004_v60 }
  0xc4   :  { %vm318_vm10 = vmand %vm2791_vm5, %vm2790_vm3 }
  0xc5   :  { %vm320_vm9 = vmor %vm313_vm8, %vm318_vm10  ;;  %vm2797_vm8 = vcmp.eq.s32.totalorder %v1561_v13, %v2027_v62  ;;  %vm2798_vm10 = vcmp.eq.s32.totalorder %v1533_v8, %v2027_v62 }
  0xc6   :  { %vm336_vm1 = vmand %vm2795_vm15, %vm2794_vm12 }
  0xe9   :  { %v1358_v10 = vpop.f32.mrf.mxu0 }
  0xea   :  { %v604_v11 = vadd.f32 %v1358_v10, %v1282_v9 }
  0xeb   :  { %v598_v12 = vpop.f32.mrf.mxu0 }
  0xec   :  { %v599_v15 = vadd.f32 %v1282_v9, %v598_v12  ;;  %v608_v19 = vmax.f32 %v604_v11, 0.0  ;;  %v1138_v12 = vld [vmem:[#allocation6 + $0xb8] sm:$0xff] }
  0xee   :  { %v607_v16 = vmax.f32 %v599_v15, 0.0  ;;  %v1137_v15 = vld [vmem:[#allocation6 + $0xb0] sm:$0xff] }
  0xf0   :  { %1367 = vmatprep.mubr.msk.f32.mxu1 %vm2786_vm13, %v607_v16  ;;  %vm329_vm13 = vmand %vm2793_vm4, %vm2792_vm14  ;;  %v1136_v16 = vld [vmem:[#allocation6 + $0xa8] sm:$0xff] }
  0xf1   :  { %1368 = vmatmul.mubr.msk.f32.vlgmr.msra.gmra.mxu1 %vm2789_vm6, %v608_v19  ;;  %vm331_vm0 = vmor %vm320_vm9, %vm329_vm13  ;;  %vm2796_vm6 = vcmp.eq.s32.totalorder %v1533_v8, %v2030_v63  ;;  %vm2799_vm9 = vcmp.eq.s32.totalorder %v1561_v13, %v2030_v63  ;;  %vm2800_vm13 = vcmp.eq.s32.totalorder %v1533_v8, %v2051_v1  ;;  %v1135_v19 = vld [vmem:[#allocation6 + $0xa0] sm:$0xff] }
  0xf2   :  { %vm338_vm11 = vmor %vm331_vm0, %vm336_vm1  ;;  %vm2801_vm0 = vcmp.eq.s32.totalorder %v1561_v13, %v2048_v0  ;;  %vm2802_vm1 = vcmp.eq.s32.totalorder %v1533_v8, %v2048_v0 }
  0xf3   :  { %vm347_vm3 = vmand %vm2797_vm8, %vm2796_vm6 }
  0xf4   :  { %vm349_vm5 = vmor %vm338_vm11, %vm347_vm3  ;;  %vm2803_vm11 = vcmp.eq.s32.totalorder %v1561_v13, %v2051_v1  ;;  %vm2804_vm3 = vcmp.eq.s32.totalorder %v1533_v8, %v2074_v4 }
  0xf5   :  { %vm354_vm14 = vmand %vm2799_vm9, %vm2798_vm10 }
  0xf6   :  { %vm356_vm4 = vmor %vm349_vm5, %vm354_vm14  ;;  %vm2805_vm5 = vcmp.eq.s32.totalorder %v1561_v13, %v2071_v3  ;;  %vm2806_vm14 = vcmp.eq.s32.totalorder %v1533_v8, %v2071_v3 }
  0xf7   :  { %vm365_vm12 = vmand %vm2801_vm0, %vm2800_vm13 }
  0xf8   :  { %vm367_vm15 = vmor %vm356_vm4, %vm365_vm12  ;;  %vm2807_vm4 = vcmp.eq.s32.totalorder %v1561_v13, %v2074_v4  ;;  %vm2808_vm12 = vcmp.eq.s32.totalorder %v1533_v8, %v2093_v6  ;;  %v952_v4 = vld [vmem:[#allocation6 + $0x78] sm:$0xff] }
  0xf9   :  { %vm372_vm6 = vmand %vm2803_vm11, %vm2802_vm1 }
  0xfa   :  { %vm374_vm8 = vmor %vm367_vm15, %vm372_vm6  ;;  %vm2809_vm15 = vcmp.eq.s32.totalorder %v1561_v13, %v2090_v5  ;;  %vm2810_vm6 = vcmp.eq.s32.totalorder %v1533_v8, %v2090_v5  ;;  %v951_v5 = vld [vmem:[#allocation6 + $0x70] sm:$0xff] }
  0xfb   :  { %vm383_vm10 = vmand %vm2805_vm5, %vm2804_vm3 }
  0xfc   :  { %vm385_vm9 = vmor %vm374_vm8, %vm383_vm10  ;;  %vm2811_vm8 = vcmp.eq.s32.totalorder %v1561_v13, %v2093_v6  ;;  %vm2812_vm10 = vcmp.eq.s32.totalorder %v1533_v8, %v2125_v18  ;;  %v950_v6 = vld [vmem:[#allocation6 + $0x68] sm:$0xff] }
  0xfd   :  { %vm390_vm13 = vmand %vm2807_vm4, %vm2806_vm14 }
  0xfe   :  { %vm392_vm0 = vmor %vm385_vm9, %vm390_vm13  ;;  %vm2813_vm9 = vcmp.eq.s32.totalorder %v1561_v13, %v2111_v17  ;;  %vm2814_vm13 = vcmp.eq.s32.totalorder %v1533_v8, %v2111_v17 }
  0xff   :  { %vm401_vm1 = vmand %vm2809_vm15, %vm2808_vm12 }
 0x100   :  { %vm403_vm11 = vmor %vm392_vm0, %vm401_vm1  ;;  %vm2815_vm0 = vcmp.eq.s32.totalorder %v1561_v13, %v2125_v18  ;;  %vm2816_vm1 = vcmp.eq.s32.totalorder %v1533_v8, %v2153_v25 }
 0x101   :  { %vm408_vm3 = vmand %vm2811_vm8, %vm2810_vm6 }
 0x102   :  { %vm410_vm5 = vmor %vm403_vm11, %vm408_vm3  ;;  %vm2817_vm11 = vcmp.eq.s32.totalorder %v1561_v13, %v2140_v22  ;;  %vm2818_vm3 = vcmp.eq.s32.totalorder %v1533_v8, %v2140_v22  ;;  %v1045_v22 = vld [vmem:[#allocation6 + $0x90] sm:$0xff] }
 0x103   :  { %vm419_vm14 = vmand %vm2813_vm9, %vm2812_vm10 }
 0x104   :  { %vm421_vm4 = vmor %vm410_vm5, %vm419_vm14  ;;  %vm2819_vm5 = vcmp.eq.s32.totalorder %v1561_v13, %v2153_v25  ;;  %vm2820_vm14 = vcmp.eq.s32.totalorder %v1533_v8, %v2175_v31  ;;  %v1044_v25 = vld [vmem:[#allocation6 + $0x88] sm:$0xff] }
 0x105   :  { %vm426_vm12 = vmand %vm2815_vm0, %vm2814_vm13 }
 0x106   :  { %vm428_vm15 = vmor %vm421_vm4, %vm426_vm12  ;;  %vm2821_vm4 = vcmp.eq.s32.totalorder %v1561_v13, %v2164_v28  ;;  %vm2822_vm12 = vcmp.eq.s32.totalorder %v1561_v13, %v2175_v31  ;;  %v1043_v28 = vld [vmem:[#allocation6 + $0x80] sm:$0xff] }
 0x107   :  { %vm437_vm6 = vmand %vm2817_vm11, %vm2816_vm1  ;;  %vm2823_vm11 = vcmp.eq.s32.totalorder %v1561_v13, %v2186_v32  ;;  %v1295_v31 = vld [vmem:[#allocation6 + $0xc3] ss:$0 sm:$0xff] }
 0x108   :  { %vm439_vm8 = vmor %vm428_vm15, %vm437_vm6 }
 0x109   :  { %vm444_vm10 = vmand %vm2819_vm5, %vm2818_vm3  ;;  %vm2824_vm3 = vcmp.eq.s32.totalorder %v1533_v8, %v2186_v32  ;;  %vm2825_vm5 = vcmp.eq.s32.totalorder %v1561_v13, %v2197_v35 }
 0x10a   :  { %vm446_vm9 = vmor %vm439_vm8, %vm444_vm10 }
 0x10b   :  { %vm455_vm13 = vmand %vm2821_vm4, %vm2820_vm14 }
 0x10c   :  { %vm457_vm0 = vmor %vm446_vm9, %vm455_vm13 }
 0x10d   :  { %vm462_vm15 = vmand %vm2822_vm12, %vm460_vm2  ;;  %vm2826_vm2 = vcmask 130048  }
 0x10e   :  { %vm464_vm1 = vmor %vm457_vm0, %vm462_vm15  ;;  %vm2830_vm15 = vcmask 261120  }
 0x10f   :  { %vm473_vm6 = vmand %vm2823_vm11, %vm471_vm7 }
 0x110   :  { %vm475_vm8 = vmor %vm464_vm1, %vm473_vm6 }
 0x111   :  { %vm480_vm10 = vmand %vm2825_vm5, %vm2824_vm3 }
 0x112   :  { %vm482_vm9 = vmor %vm475_vm8, %vm480_vm10 }
 0x113   :  { %v1281_v20 = vsel %vm482_vm9, 1.0, %v1499_v36  ;;  %vm2827_vm4 = vmmov %vm2826_vm2 }
 0x114   :  { %v491_v23 = vsel %vm2826_vm2, %v1281_v20, 0.0  ;;  %v490_v8 = vpop.xlane.xlu0 %489  ;;  %vm2828_vm13 = vmmov %vm2826_vm2 }
 0x115   :  { %492 = vadd.xlane.f32.xlu0 %v491_v23  ;;  %v494_v24 = vadd.f32 %v491_v23, %v2330_v7  ;;  %vm501_vm7 = vcmp.gt.f32.partialorder %v490_v8, 0.0  ;;  %vm2829_vm12 = vmmov %vm2826_vm2 }
 0x116   :  { %vm2831_vm1 = vmmov %vm2830_vm15 }
 0x117   :  { %v495_v26 = vrot.slane %v494_v24, 4  ;;  %vm2832_vm11 = vmmov %vm2826_vm2 }
 0x118   :  { %vm2833_vm6 = vmmov %vm2831_vm1 }
 0x119   :  { %v496_v27 = vadd.f32 %v495_v26, %v494_v24  ;;  %vm2834_vm8 = vmmov %vm2831_vm1 }
 0x11a   :  { %vm2835_vm3 = vmmov %vm2831_vm1 }
 0x11b   :  { %v497_v29 = vrot.slane %v496_v27, 2  ;;  %vm2836_vm5 = vmmov %vm2831_vm1 }
 0x11c   :  { %vm2837_vm10 = vmmov %vm2831_vm1 }
 0x11d   :  { %v498_v30 = vadd.f32 %v497_v29, %v496_v27  ;;  %vm2838_vm9 = vmmov %vm2831_vm1 }
 0x11f   :  { %v499_v33 = vrot.slane %v498_v30, 1 }
 0x121   :  { %v500_v34 = vadd.f32 %v499_v33, %v498_v30  ;;  %v1301_v33 = vld [vmem:[#allocation6 + $0xc5] ss:$0 sm:$0xff] }
 0x123   :  { %1434 = vrsqrt.f32 %v500_v34  ;;  %vm507_vm14 = vcmp.gt.f32.partialorder %v500_v34, 0.0 }
 0x124   :  { %1436 = vrsqrt.f32 %v490_v8 }
 0x130   :  { %v1435_v37 = vpop.eup %1434 }
 0x131   :  { %v1437_v13 = vpop.eup %1436  ;;  %v509_v40 = vsel %vm507_vm14, %v1435_v37, 0.0 }
 0x132   :  { %v505_v38 = vsel %vm501_vm7, %v1437_v13, 0.0 }
 0x133   :  { %v510_v41 = vmul.f32 %v2320_v39, %v505_v38 }
 0x135   :  { %v512_v42 = vmul.f32 %v510_v41, %v509_v40 }
 0x137   :  { %1374 = vmatprep.mubr.msk.f32.mxu1 %vm2827_vm4, %v512_v42  ;;  %1392 = vmatprep.mubr.msk.f32.mxu0 %vm2828_vm13, %v512_v42 }
 0x19e   :  { %v493_v43 = vpop.xlane.xlu0 %492 }
 0x19f   :  { %1438 = vrsqrt.f32 %v493_v43  ;;  %vm502_vm0 = vcmp.gt.f32.partialorder %v493_v43, 0.0 }
 0x1ac   :  { %v1439_v45 = vpop.eup %1438 }
 0x1ad   :  { %v506_v47 = vsel %vm502_vm0, %v1439_v45, 0.0 }
 0x1ae   :  { %v511_v49 = vmul.f32 %v1281_v20, %v506_v47  ;;  %v1298_v20 = vld [vmem:[#allocation6 + $0xc4] ss:$0 sm:$0xff] }
 0x1b0   :  { %v513_v53 = vmul.f32 %v511_v49, %v509_v40 }
 0x1b1   :  { %v1369_v46 = vpop.f32.mrf.mxu1 }
 0x1b2   :  { %v696_v48 = vadd.f32 %v1369_v46, %v1285_v44 }
 0x1b3   :  { %v690_v50 = vpop.f32.mrf.mxu1 }
 0x1b4   :  { %v691_v51 = vadd.f32 %v1285_v44, %v690_v50  ;;  %1370 = vmatprep.subr.mxu1 %v696_v48 }
 0x1b5   :  { %1371 = vmatpush3.msra.mxu1 %v696_v48 }
 0x1b6   :  { %1372 = vmatprep.subr.mxu1 %v691_v51 }
 0x1b7   :  { %1373 = vmatpush3.msra.mxu1 %v691_v51 }
 0x1b8   :  { %1375 = vmatmul.mubr.msk.f32.vlgmr.msra.gmra.mxu1 %vm2829_vm12, %v513_v53  ;;  %1377 = vmatprep.subr.mxu1 %v783_v52 }
 0x1b9   :  { %1378 = vmatpush3.msra.mxu1 %v783_v52 }
 0x1ba   :  { %1379 = vmatprep.subr.mxu1 %v782_v54 }
 0x1bb   :  { %1380 = vmatpush3.msra.mxu1 %v782_v54 }
 0x1bc   :  { %1381 = vmatprep.subr.mxu1 %v781_v55 }
 0x1bd   :  { %1382 = vmatpush3.msra.mxu1 %v781_v55 }
 0x1be   :  { %1383 = vmatprep.subr.mxu1 %v780_v56 }
 0x1bf   :  { %1384 = vmatpush3.msra.mxu1 %v780_v56 }
 0x1c0   :  { %1406 = vmatprep.subr.mxu1 %v1046_v21 }
 0x278   :  { %v1376_v57 = vpop.f32.mrf.mxu1 }
 0x27a   :  { %v771_v58 = vpop.f32.mrf.mxu1 }
 0x27b   :  { %1385 = vmatprep.mubr.msk.f32.mxu1 %vm2830_vm15, %v771_v58 }
 0x27c   :  { %1386 = vmatmul.mubr.msk.f32.vlgmr.msra.gmra.mxu1 %vm2831_vm1, %v1376_v57 }
 0x27d   :  { %1407 = vmatpush3.msra.mxu1 %v1046_v21 }
 0x27e   :  { %1408 = vmatprep.subr.mxu1 %v1045_v22 }
 0x27f   :  { %1409 = vmatpush3.msra.mxu1 %v1045_v22 }
 0x280   :  { %1410 = vmatprep.subr.mxu1 %v1044_v25 }
 0x281   :  { %1411 = vmatpush3.msra.mxu1 %v1044_v25 }
 0x282   :  { %1412 = vmatprep.subr.mxu1 %v1043_v28 }
 0x283   :  { %1413 = vmatpush3.msra.mxu1 %v1043_v28 }
 0x33c   :  { %v1387_v60 = vpop.f32.mrf.mxu1 }
 0x33d   :  { %v867_v61 = vadd.f32 %v1387_v60, %v1290_v59 }
 0x33e   :  { %v861_v62 = vpop.f32.mrf.mxu1 }
 0x33f   :  { %v871_v63 = vmax.f32 %v867_v61, 0.0  ;;  %v862_v0 = vadd.f32 %v1290_v59, %v861_v62 }
 0x341   :  { %v873_v1 = vadd.f32 %v871_v63, %v696_v48  ;;  %v870_v2 = vmax.f32 %v862_v0, 0.0 }
 0x343   :  { %v872_v3 = vadd.f32 %v870_v2, %v691_v51  ;;  %1388 = vmatprep.subr.mxu0 %v873_v1 }
 0x344   :  { %1389 = vmatpush3.msra.mxu0 %v873_v1 }
 0x345   :  { %1390 = vmatprep.subr.mxu0 %v872_v3 }
 0x346   :  { %1391 = vmatpush3.msra.mxu0 %v872_v3 }
 0x347   :  { %1393 = vmatmul.mubr.msk.f32.vlgmr.msra.gmra.mxu0 %vm2832_vm11, %v513_v53  ;;  %1395 = vmatprep.subr.mxu0 %v952_v4 }
 0x348   :  { %1396 = vmatpush3.msra.mxu0 %v952_v4 }
 0x349   :  { %1397 = vmatprep.subr.mxu0 %v951_v5 }
 0x34a   :  { %1398 = vmatpush3.msra.mxu0 %v951_v5 }
 0x34b   :  { %1399 = vmatprep.subr.mxu0 %v950_v6 }
 0x34c   :  { %1400 = vmatpush3.msra.mxu0 %v950_v6 }
 0x34d   :  { %1401 = vmatprep.subr.mxu0 %v949_v14 }
 0x34e   :  { %1402 = vmatpush3.msra.mxu0 %v949_v14 }
 0x34f   :  { %1417 = vmatprep.subr.mxu0 %v1138_v12 }
 0x407   :  { %v1394_v17 = vpop.f32.mrf.mxu0 }
 0x409   :  { %v940_v18 = vpop.f32.mrf.mxu0 }
 0x40a   :  { %1403 = vmatprep.mubr.msk.f32.mxu0 %vm2833_vm6, %v940_v18 }
 0x40b   :  { %1404 = vmatmul.mubr.msk.f32.vlgmr.msra.gmra.mxu0 %vm2834_vm8, %v1394_v17 }
 0x40c   :  { %1418 = vmatpush3.msra.mxu0 %v1138_v12 }
 0x40d   :  { %1419 = vmatprep.subr.mxu0 %v1137_v15 }
 0x40e   :  { %1420 = vmatpush3.msra.mxu0 %v1137_v15 }
 0x40f   :  { %1421 = vmatprep.subr.mxu0 %v1136_v16 }
 0x410   :  { %1422 = vmatpush3.msra.mxu0 %v1136_v16 }
 0x411   :  { %1423 = vmatprep.subr.mxu0 %v1135_v19 }
 0x412   :  { %1424 = vmatpush3.msra.mxu0 %v1135_v19 }
 0x4cb   :  { %v1405_v32 = vpop.f32.mrf.mxu0 }
 0x4cc   :  { %v1036_v35 = vadd.f32 %v1405_v32, %v1295_v31 }
 0x4cd   :  { %v1030_v36 = vpop.f32.mrf.mxu0 }
 0x4ce   :  { %v1031_v39 = vadd.f32 %v1295_v31, %v1030_v36  ;;  %v1040_v7 = vmax.f32 %v1036_v35, 0.0 }
 0x4d0   :  { %v1039_v9 = vmax.f32 %v1031_v39, 0.0  ;;  %v1042_v11 = vadd.f32 %v1040_v7, %v873_v1 }
 0x4d2   :  { %v1041_v10 = vadd.f32 %v1039_v9, %v872_v3 }
 0x4d4   :  { %1414 = vmatprep.mubr.msk.f32.mxu1 %vm2835_vm3, %v1041_v10 }
 0x4d5   :  { %1415 = vmatmul.mubr.msk.f32.vlgmr.msra.gmra.mxu1 %vm2836_vm5, %v1042_v11 }
 0x595   :  { %v1416_v23 = vpop.f32.mrf.mxu1 }
 0x596   :  { %v1130_v24 = vadd.f32 %v1416_v23, %v1298_v20 }
 0x597   :  { %v1124_v26 = vpop.f32.mrf.mxu1 }
 0x598   :  { %v1125_v27 = vadd.f32 %v1298_v20, %v1124_v26  ;;  %v1134_v30 = vmax.f32 %v1130_v24, 0.0 }
 0x59a   :  { %v1133_v29 = vmax.f32 %v1125_v27, 0.0 }
 0x59c   :  { %1425 = vmatprep.mubr.msk.f32.mxu0 %vm2837_vm10, %v1133_v29 }
 0x59d   :  { %1426 = vmatmul.mubr.msk.f32.vlgmr.msra.gmra.mxu0 %vm2838_vm9, %v1134_v30 }
 0x65d   :  { %v1427_v34 = vpop.f32.mrf.mxu0 }
 0x65e   :  { %v1222_v8 = vadd.f32 %v1427_v34, %v1301_v33 }
 0x65f   :  { %v1216_v37 = vpop.f32.mrf.mxu0 }
 0x660   :  { %1226 = vst [vmem:[%s2645_s3 + $0x8] sm:$0xff] %v1222_v8  ;;  %v1217_v13 = vadd.f32 %v1301_v33, %v1216_v37 }
 0x662   :  { %1225 = vst [vmem:[%s2645_s3] sm:$0xff] %v1217_v13 }
 0x663   :  { %1231 = vsyncpa [#allocation5], 1 }
 0x664   :  { %1232 = vsyncpa [#allocation7], 1 }

</bundles_post_ra>
